<compile_context>
chip_gen: v6e
topology: v6e:2x2x1
jax: 0.10.0
libtpu: 0.0.40
codegen_flags: <defaults>
</compile_context>

<pallas_src>
import numpy as np
import jax
import jax.numpy as jnp
from jax.experimental import pallas as pl
from jax.experimental.pallas import tpu as pltpu


# ----------------------------- Pallas kernel ---------------------------------

def make_decoder_kernel(L, H):
    """Kernel body for num_layers=L, hidden_size=H (static)."""
    H2, H3 = 2 * H, 3 * H

    def kernel(emb_ref, hid_ref, enc_ref, attn_wt_ref, attn_bv_ref,
               w_in_ref, w_hh_ref, gru_b_ref, fc_w_ref, fc_b_ref,
               logits_ref, hid_out_ref):
        emb = emb_ref[...]                        # (B, H)
        hid = hid_ref[...]                        # (2L, B, H)
        enc = enc_ref[...]                        # (B, S, 2H)
        B, S = enc.shape[0], enc.shape[1]

        # ----------------------------- attention ----------------------------
        attn_wt = attn_wt_ref[...]                # (3H, H)  == attn_W.T
        attn_bv = attn_bv_ref[...]                # (2, H)   == [bias ; v]
        h_last = hid[2 * L - 1]                   # (B, H)

        # [h, enc] @ attn_W.T  split into two dots (no lane concat)
        e_h = jnp.dot(h_last, attn_wt[:H], preferred_element_type=jnp.float32)
        e_e = jnp.dot(enc.reshape(B * S, H2), attn_wt[H:],
                      preferred_element_type=jnp.float32).reshape(B, S, H)
        energies = jnp.tanh(e_e + e_h[:, None, :] + attn_bv[0][None, None, :])

        scores = jnp.sum(energies * attn_bv[1][None, None, :], axis=-1)   # (B,S)
        m = jnp.max(scores, axis=-1, keepdims=True)
        ex = jnp.exp(scores - m)
        denom = jnp.sum(ex, axis=-1, keepdims=True)
        attn_w = ex * pl.reciprocal(denom, approx=True)                   # (B,S)

        # context = attn_w^T @ enc on the MXU: (B,1,S) x (B,S,2H) -> (B,2H)
        context = jnp.einsum('bqs,bsh->bqh', attn_w[:, None, :], enc,
                             preferred_element_type=jnp.float32)[:, 0]

        # -------------- bidirectional GRU, seq_len == 1, L layers -----------
        # layer input kept as its two natural lane blocks -> no concats.
        in_f, in_b = emb, context                 # layer 0: [emb | context]
        new_hidden = []
        for l in range(L):
            w_in_l = w_in_ref[l]                  # (3H, 6H): [dir0 | dir1] cols
            wa = w_in_l[:H]                       # rows for the first block
            wb = w_in_l[H:H3] if l == 0 else w_in_l[H:H2]
            # gi for BOTH directions in one pair of input-block dots
            gi_all = (jnp.dot(in_f, wa, preferred_element_type=jnp.float32) +
                      jnp.dot(in_b, wb, preferred_element_type=jnp.float32))

            outs = []
            for d in range(2):
                idx = 2 * l + d
                h0 = hid[idx]                     # (B, H)
                b = gru_b_ref[idx]                # (2, 3H): [b_ih ; b_hh]
                gi = gi_all[:, d * H3:(d + 1) * H3] + b[0][None, :]
                gh = (jnp.dot(h0, w_hh_ref[idx],
                              preferred_element_type=jnp.float32)
                      + b[1][None, :])
                r = jax.nn.sigmoid(gi[:, :H] + gh[:, :H])
                z = jax.nn.sigmoid(gi[:, H:H2] + gh[:, H:H2])
                n = jnp.tanh(gi[:, H2:] + r * gh[:, H2:])
                outs.append((1.0 - z) * n + z * h0)
            new_hidden.extend(outs)
            in_f, in_b = outs[0], outs[1]         # next layer input blocks

        # single bulk store of the new hidden state
        hid_out_ref[...] = jnp.stack(new_hidden, axis=0)

        # ----------------------------- fc_out --------------------------------
        # [h_f | h_b] @ fc_W.T split into two dots; output is lane-dense (Vp).
        fc_w = fc_w_ref[...]                      # (2H, Vp)
        logits_ref[...] = (
            jnp.dot(in_f, fc_w[:H], preferred_element_type=jnp.float32) +
            jnp.dot(in_b, fc_w[H:], preferred_element_type=jnp.float32) +
            fc_b_ref[...][0][None, :])

    return kernel


# ----------------------- one-time weight preparation --------------------------

def prepare_decoder_params(params):
    """Pack/transposes all weights ONCE (outside the per-decode-step call)."""
    H = params["hidden_size"]
    L = params["num_layers"]
    V = params["output_size"]
    Vp = max(128, ((V + 127) // 128) * 128)       # lane-dense vocab padding
    f = np.float32

    attn_wt = np.asarray(params["attn_W"]).T.astype(f)                 # (3H, H)
    attn_bv = np.stack([np.asarray(params["attn_b"]),
                        np.asarray(params["v_W"])[0]]).astype(f)       # (2, H)

    w_in = np.zeros((L, 3 * H, 6 * H), f)      # rows: input features, cols: dirs
    w_hh = np.zeros((2 * L, H, 3 * H), f)
    gru_b = np.zeros((2 * L, 2, 3 * H), f)     # [:, 0]=b_ih, [:, 1]=b_hh
    for l in range(L):
        in_l = 3 * H if l == 0 else 2 * H
        for d in range(2):
            Wih, Whh, bih, bhh = (np.asarray(a) for a in params["gru"][(l, d)])
            w_in[l, :in_l, d * 3 * H:(d + 1) * 3 * H] = Wih.T
            w_hh[2 * l + d] = Whh.T
            gru_b[2 * l + d, 0] = bih
            gru_b[2 * l + d, 1] = bhh

    fc_wt = np.zeros((2 * H, Vp), f)
    fc_wt[:, :V] = np.asarray(params["fc_W"]).T
    fc_b = np.zeros((1, Vp), f)
    fc_b[0, :V] = np.asarray(params["fc_b"])

    return {
        "hidden_size": H, "num_layers": L, "output_size": V, "vocab_pad": Vp,
        "embedding": params["embedding"],
        "attn_wt": jnp.asarray(attn_wt), "attn_bv": jnp.asarray(attn_bv),
        "gru_w_in": jnp.asarray(w_in), "gru_w_hh": jnp.asarray(w_hh),
        "gru_b": jnp.asarray(gru_b),
        "fc_wt": jnp.asarray(fc_wt), "fc_b": jnp.asarray(fc_b),
    }


# ----------------------------- per-step wrapper --------------------------------

def decoder_forward(prep, x, hidden, encoder_outputs):
    H, L = prep["hidden_size"], prep["num_layers"]
    V, Vp = prep["output_size"], prep["vocab_pad"]
    B, S, _ = encoder_outputs.shape

    # glue: embedding gather; dropout == identity (eval mode)
    embedded = jnp.take(prep["embedding"], x[:, 0], axis=0)             # (B, H)

    ins = [embedded, hidden, encoder_outputs,
           prep["attn_wt"], prep["attn_bv"],
           prep["gru_w_in"], prep["gru_w_hh"], prep["gru_b"],
           prep["fc_wt"], prep["fc_b"]]

    # advisory cost estimate so XLA schedules the glue around this small call
    flops = (2 * B * H * H + 2 * B * S * 2 * H * H
             + 2 * B * S * H + 2 * B * S * 2 * H)
    for l in range(L):
        in_l = 3 * H if l == 0 else 2 * H
        flops += 2 * B * in_l * 6 * H + 2 * 2 * B * H * 3 * H + 12 * B * 3 * H
    flops += 2 * B * 2 * H * Vp
    trans = B * S * H + B * S + B + 6 * L * B * H
    nbytes = 4 * (sum(int(np.prod(a.shape)) for a in ins)
                  + B * Vp + 2 * L * B * H)
    cost = pl.CostEstimate(flops=flops, transcendentals=trans,
                           bytes_accessed=nbytes)

    kernel = make_decoder_kernel(L, H)
    logits_p, new_hidden = pl.pallas_call(
        kernel,
        out_shape=(jax.ShapeDtypeStruct((B, Vp), jnp.float32),
                   jax.ShapeDtypeStruct((2 * L, B, H), jnp.float32)),
        in_specs=[pl.BlockSpec(memory_space=pltpu.MemorySpace.VMEM)] * len(ins),
        out_specs=(pl.BlockSpec(memory_space=pltpu.MemorySpace.VMEM),
                   pl.BlockSpec(memory_space=pltpu.MemorySpace.VMEM)),
        cost_estimate=cost,
    )(*ins)

    return logits_p[:, :V][:, None, :], new_hidden


# ----------------------------- pure-JAX reference -----------------------------

def decoder_ref(params, x, hidden, encoder_outputs):
    H = params["hidden_size"]
    L = params["num_layers"]
    emb = params["embedding"][x[:, 0]]                                  # (B, H)
    B, S, _ = encoder_outputs.shape

    h_last = hidden[-1]
    hexp = jnp.repeat(h_last[:, None, :], S, axis=1)                    # (B,S,H)
    ai = jnp.concatenate([hexp, encoder_outputs], axis=2)               # (B,S,3H)
    en = jnp.tanh(ai @ params["attn_W"].T + params["attn_b"])
    sc = en @ params["v_W"].T                                           # (B,S,1)
    aw = jax.nn.softmax(sc, axis=1)
    context = jnp.matmul(jnp.swapaxes(aw, 1, 2), encoder_outputs)       # (B,1,2H)

    layer_in = jnp.concatenate([emb, context[:, 0, :]], axis=-1)        # (B,3H)
    new_hidden = []
    for l in range(L):
        outs = []
        for d in range(2):
            Wih, Whh, bih, bhh = params["gru"][(l, d)]
            h0 = hidden[2 * l + d]
            gi = layer_in @ Wih.T + bih
            gh = h0 @ Whh.T + bhh
            r = jax.nn.sigmoid(gi[:, :H] + gh[:, :H])
            z = jax.nn.sigmoid(gi[:, H:2 * H] + gh[:, H:2 * H])
            n = jnp.tanh(gi[:, 2 * H:] + r * gh[:, 2 * H:])
            hn = (1.0 - z) * n + z * h0
            outs.append(hn)
            new_hidden.append(hn)
        layer_in = jnp.concatenate(outs, axis=-1)
    logits = layer_in @ params["fc_W"].T + params["fc_b"]
    return logits[:, None, :], jnp.stack(new_hidden)


# ----------------------------- params / main ---------------------------------

def init_params(key, output_size, hidden_size, num_layers):
    H, V, L = hidden_size, output_size, num_layers
    keys = iter(jax.random.split(key, 64))
    nrm = lambda shp, s=0.1: (s * jax.random.normal(next(keys), shp)).astype(jnp.float32)

    params = {
        "hidden_size": H, "num_layers": L, "output_size": V,
        "embedding": nrm((V, H)),
        "attn_W": nrm((H, 3 * H)), "attn_b": nrm((H,)),
        "v_W": nrm((1, H)),
        "fc_W": nrm((V, 2 * H)), "fc_b": nrm((V,)),
        "gru": {},
    }
    for l in range(L):
        in_size = 3 * H if l == 0 else 2 * H
        for d in range(2):
            params["gru"][(l, d)] = (
                nrm((3 * H, in_size)),   # W_ih
                nrm((3 * H, H)),         # W_hh
                nrm((3 * H,)),           # b_ih
                nrm((3 * H,)),           # b_hh
            )
    return params


if __name__ == "__main__":
    B, S, H, V, L = 2, 8, 32, 16, 2

    key = jax.random.PRNGKey(0)
    kp, kx, kh, ke = jax.random.split(key, 4)

    params = init_params(kp, output_size=V, hidden_size=H, num_layers=L)
    prep = prepare_decoder_params(params)   # one-time, outside the decode loop

    x = jax.random.randint(kx, (B, 1), 0, V, dtype=jnp.int32)
    hidden = (0.1 * jax.random.normal(kh, (2 * L, B, H))).astype(jnp.float32)
    encoder_outputs = (0.1 * jax.random.normal(ke, (B, S, 2 * H))).astype(jnp.float32)

    logits, new_hidden = decoder_forward(prep, x, hidden, encoder_outputs)
    jax.block_until_ready((logits, new_hidden))

    with jax.default_matmul_precision("float32"):
        logits_ref, hidden_ref = decoder_ref(params, x, hidden, encoder_outputs)

    np.testing.assert_allclose(np.asarray(logits), np.asarray(logits_ref),
                               rtol=5e-3, atol=5e-3)
    np.testing.assert_allclose(np.asarray(new_hidden), np.asarray(hidden_ref),
                               rtol=5e-3, atol=5e-3)

    print("KERNEL_OK")
</pallas_src>

<mosaic_0001>
module attributes {stable_mosaic.version = 11 : i64} {
  func.func @kernel(%arg0: memref<2x32xf32, #tpu.memory_space<vmem>>, %arg1: memref<4x2x32xf32, #tpu.memory_space<vmem>>, %arg2: memref<2x8x64xf32, #tpu.memory_space<vmem>>, %arg3: memref<96x32xf32, #tpu.memory_space<vmem>>, %arg4: memref<2x32xf32, #tpu.memory_space<vmem>>, %arg5: memref<2x96x192xf32, #tpu.memory_space<vmem>>, %arg6: memref<4x32x96xf32, #tpu.memory_space<vmem>>, %arg7: memref<4x2x96xf32, #tpu.memory_space<vmem>>, %arg8: memref<64x128xf32, #tpu.memory_space<vmem>>, %arg9: memref<1x128xf32, #tpu.memory_space<vmem>>, %arg10: memref<2x128xf32, #tpu.memory_space<vmem>>, %arg11: memref<4x2x32xf32, #tpu.memory_space<vmem>>) attributes {dimension_semantics = [], scalar_prefetch = 0 : i64, scratch_operands = 0 : i64, tpu.core_type = #tpu.core_type<tc>} {
    %c0 = arith.constant 0 : index
    %c0_0 = arith.constant 0 : index
    %0 = vector.load %arg0[%c0, %c0_0] : memref<2x32xf32, #tpu.memory_space<vmem>>, vector<2x32xf32>
    %c0_1 = arith.constant 0 : index
    %c0_2 = arith.constant 0 : index
    %c0_3 = arith.constant 0 : index
    %1 = vector.load %arg1[%c0_1, %c0_2, %c0_3] : memref<4x2x32xf32, #tpu.memory_space<vmem>>, vector<4x2x32xf32>
    %c0_4 = arith.constant 0 : index
    %c0_5 = arith.constant 0 : index
    %c0_6 = arith.constant 0 : index
    %2 = vector.load %arg2[%c0_4, %c0_5, %c0_6] : memref<2x8x64xf32, #tpu.memory_space<vmem>>, vector<2x8x64xf32>
    %c0_7 = arith.constant 0 : index
    %c0_8 = arith.constant 0 : index
    %3 = vector.load %arg3[%c0_7, %c0_8] : memref<96x32xf32, #tpu.memory_space<vmem>>, vector<96x32xf32>
    %c0_9 = arith.constant 0 : index
    %c0_10 = arith.constant 0 : index
    %4 = vector.load %arg4[%c0_9, %c0_10] : memref<2x32xf32, #tpu.memory_space<vmem>>, vector<2x32xf32>
    %5 = vector.extract_strided_slice %1 {offsets = [3, 0, 0], sizes = [1, 2, 32], strides = [1, 1, 1]} : vector<4x2x32xf32> to vector<1x2x32xf32>
    %6 = vector.shape_cast %5 : vector<1x2x32xf32> to vector<2x32xf32>
    %7 = vector.extract_strided_slice %3 {offsets = [0, 0], sizes = [32, 32], strides = [1, 1]} : vector<96x32xf32> to vector<32x32xf32>
    %cst = arith.constant dense<0.000000e+00> : vector<2x32xf32>
    %8 = tpu.matmul %6, %7, %cst {dimension_numbers = #tpu.dot_dimension_numbers<[1], [0], [0], [1], [0, 0, 1, 1], [], []>} : vector<2x32xf32>, vector<32x32xf32>, vector<2x32xf32> -> vector<2x32xf32>
    %9 = vector.shape_cast %2 : vector<2x8x64xf32> to vector<16x64xf32>
    %10 = vector.extract_strided_slice %3 {offsets = [32, 0], sizes = [64, 32], strides = [1, 1]} : vector<96x32xf32> to vector<64x32xf32>
    %cst_11 = arith.constant dense<0.000000e+00> : vector<16x32xf32>
    %11 = tpu.matmul %9, %10, %cst_11 {dimension_numbers = #tpu.dot_dimension_numbers<[1], [0], [0], [1], [0, 0, 1, 1], [], []>} : vector<16x64xf32>, vector<64x32xf32>, vector<16x32xf32> -> vector<16x32xf32>
    %12 = vector.shape_cast %11 : vector<16x32xf32> to vector<2x8x32xf32>
    %13 = vector.shape_cast %8 : vector<2x32xf32> to vector<2x1x32xf32>
    %14 = vector.broadcast %13 : vector<2x1x32xf32> to vector<2x8x32xf32>
    %15 = arith.addf %12, %14 : vector<2x8x32xf32>
    %16 = vector.extract_strided_slice %4 {offsets = [0, 0], sizes = [1, 32], strides = [1, 1]} : vector<2x32xf32> to vector<1x32xf32>
    %17 = vector.shape_cast %16 : vector<1x32xf32> to vector<32xf32>
    %18 = vector.shape_cast %17 : vector<32xf32> to vector<1x1x32xf32>
    %19 = vector.broadcast %18 : vector<1x1x32xf32> to vector<2x8x32xf32>
    %20 = arith.addf %15, %19 : vector<2x8x32xf32>
    %21 = math.tanh %20 : vector<2x8x32xf32>
    %22 = vector.extract_strided_slice %4 {offsets = [1, 0], sizes = [1, 32], strides = [1, 1]} : vector<2x32xf32> to vector<1x32xf32>
    %23 = vector.shape_cast %22 : vector<1x32xf32> to vector<32xf32>
    %24 = vector.shape_cast %23 : vector<32xf32> to vector<1x1x32xf32>
    %25 = vector.broadcast %24 : vector<1x1x32xf32> to vector<2x8x32xf32>
    %26 = arith.mulf %21, %25 : vector<2x8x32xf32>
    %cst_12 = arith.constant dense<0.000000e+00> : vector<2x8xf32>
    %27 = vector.multi_reduction <add>, %26, %cst_12 [2] : vector<2x8x32xf32> to vector<2x8xf32>
    %cst_13 = arith.constant dense<0xFF800000> : vector<2xf32>
    %28 = vector.multi_reduction <maximumf>, %27, %cst_13 [1] : vector<2x8xf32> to vector<2xf32>
    %29 = vector.shape_cast %28 : vector<2xf32> to vector<2x1xf32>
    %30 = vector.broadcast %29 : vector<2x1xf32> to vector<2x8xf32>
    %31 = arith.subf %27, %30 : vector<2x8xf32>
    %32 = math.exp %31 : vector<2x8xf32>
    %cst_14 = arith.constant dense<0.000000e+00> : vector<2xf32>
    %33 = vector.multi_reduction <add>, %32, %cst_14 [1] : vector<2x8xf32> to vector<2xf32>
    %34 = vector.shape_cast %33 : vector<2xf32> to vector<2x1xf32>
    %35 = tpu.reciprocal %34 {approx = true} : vector<2x1xf32> -> vector<2x1xf32>
    %36 = vector.broadcast %35 : vector<2x1xf32> to vector<2x8xf32>
    %37 = arith.mulf %32, %36 : vector<2x8xf32>
    %38 = vector.shape_cast %37 : vector<2x8xf32> to vector<2x1x8xf32>
    "tpu.trace_start"() <{level = 10 : i32, message = "bqs,bsh->bqh"}> : () -> ()
    %cst_15 = arith.constant dense<0.000000e+00> : vector<2x1x64xf32>
    %39 = tpu.matmul %38, %2, %cst_15 {dimension_numbers = #tpu.dot_dimension_numbers<[2], [1], [1], [2], [0, 0, 0, 1, 1, 2], [0], [0]>} : vector<2x1x8xf32>, vector<2x8x64xf32>, vector<2x1x64xf32> -> vector<2x1x64xf32>
    "tpu.trace_stop"() : () -> ()
    %40 = vector.shape_cast %39 : vector<2x1x64xf32> to vector<2x64xf32>
    %c0_16 = arith.constant 0 : index
    %c0_17 = arith.constant 0 : index
    %c0_18 = arith.constant 0 : index
    %41 = vector.load %arg5[%c0_16, %c0_17, %c0_18] : memref<2x96x192xf32, #tpu.memory_space<vmem>>, vector<1x96x192xf32>
    %42 = vector.shape_cast %41 : vector<1x96x192xf32> to vector<96x192xf32>
    %43 = vector.extract_strided_slice %42 {offsets = [0, 0], sizes = [32, 192], strides = [1, 1]} : vector<96x192xf32> to vector<32x192xf32>
    %44 = vector.extract_strided_slice %42 {offsets = [32, 0], sizes = [64, 192], strides = [1, 1]} : vector<96x192xf32> to vector<64x192xf32>
    %cst_19 = arith.constant dense<0.000000e+00> : vector<2x192xf32>
    %45 = tpu.matmul %0, %43, %cst_19 {dimension_numbers = #tpu.dot_dimension_numbers<[1], [0], [0], [1], [0, 0, 1, 1], [], []>} : vector<2x32xf32>, vector<32x192xf32>, vector<2x192xf32> -> vector<2x192xf32>
    %cst_20 = arith.constant dense<0.000000e+00> : vector<2x192xf32>
    %46 = tpu.matmul %40, %44, %cst_20 {dimension_numbers = #tpu.dot_dimension_numbers<[1], [0], [0], [1], [0, 0, 1, 1], [], []>} : vector<2x64xf32>, vector<64x192xf32>, vector<2x192xf32> -> vector<2x192xf32>
    %47 = arith.addf %45, %46 : vector<2x192xf32>
    %48 = vector.extract_strided_slice %1 {offsets = [0, 0, 0], sizes = [1, 2, 32], strides = [1, 1, 1]} : vector<4x2x32xf32> to vector<1x2x32xf32>
    %49 = vector.shape_cast %48 : vector<1x2x32xf32> to vector<2x32xf32>
    %c0_21 = arith.constant 0 : index
    %c0_22 = arith.constant 0 : index
    %c0_23 = arith.constant 0 : index
    %50 = vector.load %arg7[%c0_21, %c0_22, %c0_23] : memref<4x2x96xf32, #tpu.memory_space<vmem>>, vector<1x2x96xf32>
    %51 = vector.shape_cast %50 : vector<1x2x96xf32> to vector<2x96xf32>
    %52 = vector.extract_strided_slice %47 {offsets = [0, 0], sizes = [2, 96], strides = [1, 1]} : vector<2x192xf32> to vector<2x96xf32>
    %53 = vector.extract_strided_slice %51 {offsets = [0, 0], sizes = [1, 96], strides = [1, 1]} : vector<2x96xf32> to vector<1x96xf32>
    %54 = vector.shape_cast %53 : vector<1x96xf32> to vector<96xf32>
    %55 = vector.shape_cast %54 : vector<96xf32> to vector<1x96xf32>
    %56 = vector.broadcast %55 : vector<1x96xf32> to vector<2x96xf32>
    %57 = arith.addf %52, %56 : vector<2x96xf32>
    %c0_24 = arith.constant 0 : index
    %c0_25 = arith.constant 0 : index
    %c0_26 = arith.constant 0 : index
    %58 = vector.load %arg6[%c0_24, %c0_25, %c0_26] : memref<4x32x96xf32, #tpu.memory_space<vmem>>, vector<1x32x96xf32>
    %59 = vector.shape_cast %58 : vector<1x32x96xf32> to vector<32x96xf32>
    %cst_27 = arith.constant dense<0.000000e+00> : vector<2x96xf32>
    %60 = tpu.matmul %49, %59, %cst_27 {dimension_numbers = #tpu.dot_dimension_numbers<[1], [0], [0], [1], [0, 0, 1, 1], [], []>} : vector<2x32xf32>, vector<32x96xf32>, vector<2x96xf32> -> vector<2x96xf32>
    %61 = vector.extract_strided_slice %51 {offsets = [1, 0], sizes = [1, 96], strides = [1, 1]} : vector<2x96xf32> to vector<1x96xf32>
    %62 = vector.shape_cast %61 : vector<1x96xf32> to vector<96xf32>
    %63 = vector.shape_cast %62 : vector<96xf32> to vector<1x96xf32>
    %64 = vector.broadcast %63 : vector<1x96xf32> to vector<2x96xf32>
    %65 = arith.addf %60, %64 : vector<2x96xf32>
    %66 = vector.extract_strided_slice %57 {offsets = [0, 0], sizes = [2, 32], strides = [1, 1]} : vector<2x96xf32> to vector<2x32xf32>
    %67 = vector.extract_strided_slice %65 {offsets = [0, 0], sizes = [2, 32], strides = [1, 1]} : vector<2x96xf32> to vector<2x32xf32>
    %68 = arith.addf %66, %67 : vector<2x32xf32>
    %69 = arith.negf %68 : vector<2x32xf32>
    %70 = math.exp %69 : vector<2x32xf32>
    %cst_28 = arith.constant 1.000000e+00 : f32
    %71 = vector.broadcast %cst_28 : f32 to vector<2x32xf32>
    %72 = arith.addf %71, %70 : vector<2x32xf32>
    %73 = arith.divf %71, %72 : vector<2x32xf32>
    %74 = vector.extract_strided_slice %57 {offsets = [0, 32], sizes = [2, 32], strides = [1, 1]} : vector<2x96xf32> to vector<2x32xf32>
    %75 = vector.extract_strided_slice %65 {offsets = [0, 32], sizes = [2, 32], strides = [1, 1]} : vector<2x96xf32> to vector<2x32xf32>
    %76 = arith.addf %74, %75 : vector<2x32xf32>
    %77 = arith.negf %76 : vector<2x32xf32>
    %78 = math.exp %77 : vector<2x32xf32>
    %cst_29 = arith.constant 1.000000e+00 : f32
    %79 = vector.broadcast %cst_29 : f32 to vector<2x32xf32>
    %80 = arith.addf %79, %78 : vector<2x32xf32>
    %81 = arith.divf %79, %80 : vector<2x32xf32>
    %82 = vector.extract_strided_slice %57 {offsets = [0, 64], sizes = [2, 32], strides = [1, 1]} : vector<2x96xf32> to vector<2x32xf32>
    %83 = vector.extract_strided_slice %65 {offsets = [0, 64], sizes = [2, 32], strides = [1, 1]} : vector<2x96xf32> to vector<2x32xf32>
    %84 = arith.mulf %73, %83 : vector<2x32xf32>
    %85 = arith.addf %82, %84 : vector<2x32xf32>
    %86 = math.tanh %85 : vector<2x32xf32>
    %cst_30 = arith.constant 1.000000e+00 : f32
    %87 = vector.broadcast %cst_30 : f32 to vector<2x32xf32>
    %88 = arith.subf %87, %81 : vector<2x32xf32>
    %89 = arith.mulf %88, %86 : vector<2x32xf32>
    %90 = arith.mulf %81, %49 : vector<2x32xf32>
    %91 = arith.addf %89, %90 : vector<2x32xf32>
    %92 = vector.extract_strided_slice %1 {offsets = [1, 0, 0], sizes = [1, 2, 32], strides = [1, 1, 1]} : vector<4x2x32xf32> to vector<1x2x32xf32>
    %93 = vector.shape_cast %92 : vector<1x2x32xf32> to vector<2x32xf32>
    %c1 = arith.constant 1 : index
    %c0_31 = arith.constant 0 : index
    %c0_32 = arith.constant 0 : index
    %94 = vector.load %arg7[%c1, %c0_31, %c0_32] : memref<4x2x96xf32, #tpu.memory_space<vmem>>, vector<1x2x96xf32>
    %95 = vector.shape_cast %94 : vector<1x2x96xf32> to vector<2x96xf32>
    %96 = vector.extract_strided_slice %47 {offsets = [0, 96], sizes = [2, 96], strides = [1, 1]} : vector<2x192xf32> to vector<2x96xf32>
    %97 = vector.extract_strided_slice %95 {offsets = [0, 0], sizes = [1, 96], strides = [1, 1]} : vector<2x96xf32> to vector<1x96xf32>
    %98 = vector.shape_cast %97 : vector<1x96xf32> to vector<96xf32>
    %99 = vector.shape_cast %98 : vector<96xf32> to vector<1x96xf32>
    %100 = vector.broadcast %99 : vector<1x96xf32> to vector<2x96xf32>
    %101 = arith.addf %96, %100 : vector<2x96xf32>
    %c1_33 = arith.constant 1 : index
    %c0_34 = arith.constant 0 : index
    %c0_35 = arith.constant 0 : index
    %102 = vector.load %arg6[%c1_33, %c0_34, %c0_35] : memref<4x32x96xf32, #tpu.memory_space<vmem>>, vector<1x32x96xf32>
    %103 = vector.shape_cast %102 : vector<1x32x96xf32> to vector<32x96xf32>
    %cst_36 = arith.constant dense<0.000000e+00> : vector<2x96xf32>
    %104 = tpu.matmul %93, %103, %cst_36 {dimension_numbers = #tpu.dot_dimension_numbers<[1], [0], [0], [1], [0, 0, 1, 1], [], []>} : vector<2x32xf32>, vector<32x96xf32>, vector<2x96xf32> -> vector<2x96xf32>
    %105 = vector.extract_strided_slice %95 {offsets = [1, 0], sizes = [1, 96], strides = [1, 1]} : vector<2x96xf32> to vector<1x96xf32>
    %106 = vector.shape_cast %105 : vector<1x96xf32> to vector<96xf32>
    %107 = vector.shape_cast %106 : vector<96xf32> to vector<1x96xf32>
    %108 = vector.broadcast %107 : vector<1x96xf32> to vector<2x96xf32>
    %109 = arith.addf %104, %108 : vector<2x96xf32>
    %110 = vector.extract_strided_slice %101 {offsets = [0, 0], sizes = [2, 32], strides = [1, 1]} : vector<2x96xf32> to vector<2x32xf32>
    %111 = vector.extract_strided_slice %109 {offsets = [0, 0], sizes = [2, 32], strides = [1, 1]} : vector<2x96xf32> to vector<2x32xf32>
    %112 = arith.addf %110, %111 : vector<2x32xf32>
    %113 = arith.negf %112 : vector<2x32xf32>
    %114 = math.exp %113 : vector<2x32xf32>
    %cst_37 = arith.constant 1.000000e+00 : f32
    %115 = vector.broadcast %cst_37 : f32 to vector<2x32xf32>
    %116 = arith.addf %115, %114 : vector<2x32xf32>
    %117 = arith.divf %115, %116 : vector<2x32xf32>
    %118 = vector.extract_strided_slice %101 {offsets = [0, 32], sizes = [2, 32], strides = [1, 1]} : vector<2x96xf32> to vector<2x32xf32>
    %119 = vector.extract_strided_slice %109 {offsets = [0, 32], sizes = [2, 32], strides = [1, 1]} : vector<2x96xf32> to vector<2x32xf32>
    %120 = arith.addf %118, %119 : vector<2x32xf32>
    %121 = arith.negf %120 : vector<2x32xf32>
    %122 = math.exp %121 : vector<2x32xf32>
    %cst_38 = arith.constant 1.000000e+00 : f32
    %123 = vector.broadcast %cst_38 : f32 to vector<2x32xf32>
    %124 = arith.addf %123, %122 : vector<2x32xf32>
    %125 = arith.divf %123, %124 : vector<2x32xf32>
    %126 = vector.extract_strided_slice %101 {offsets = [0, 64], sizes = [2, 32], strides = [1, 1]} : vector<2x96xf32> to vector<2x32xf32>
    %127 = vector.extract_strided_slice %109 {offsets = [0, 64], sizes = [2, 32], strides = [1, 1]} : vector<2x96xf32> to vector<2x32xf32>
    %128 = arith.mulf %117, %127 : vector<2x32xf32>
    %129 = arith.addf %126, %128 : vector<2x32xf32>
    %130 = math.tanh %129 : vector<2x32xf32>
    %cst_39 = arith.constant 1.000000e+00 : f32
    %131 = vector.broadcast %cst_39 : f32 to vector<2x32xf32>
    %132 = arith.subf %131, %125 : vector<2x32xf32>
    %133 = arith.mulf %132, %130 : vector<2x32xf32>
    %134 = arith.mulf %125, %93 : vector<2x32xf32>
    %135 = arith.addf %133, %134 : vector<2x32xf32>
    %c1_40 = arith.constant 1 : index
    %c0_41 = arith.constant 0 : index
    %c0_42 = arith.constant 0 : index
    %136 = vector.load %arg5[%c1_40, %c0_41, %c0_42] : memref<2x96x192xf32, #tpu.memory_space<vmem>>, vector<1x96x192xf32>
    %137 = vector.shape_cast %136 : vector<1x96x192xf32> to vector<96x192xf32>
    %138 = vector.extract_strided_slice %137 {offsets = [0, 0], sizes = [32, 192], strides = [1, 1]} : vector<96x192xf32> to vector<32x192xf32>
    %139 = vector.extract_strided_slice %137 {offsets = [32, 0], sizes = [32, 192], strides = [1, 1]} : vector<96x192xf32> to vector<32x192xf32>
    %cst_43 = arith.constant dense<0.000000e+00> : vector<2x192xf32>
    %140 = tpu.matmul %91, %138, %cst_43 {dimension_numbers = #tpu.dot_dimension_numbers<[1], [0], [0], [1], [0, 0, 1, 1], [], []>} : vector<2x32xf32>, vector<32x192xf32>, vector<2x192xf32> -> vector<2x192xf32>
    %cst_44 = arith.constant dense<0.000000e+00> : vector<2x192xf32>
    %141 = tpu.matmul %135, %139, %cst_44 {dimension_numbers = #tpu.dot_dimension_numbers<[1], [0], [0], [1], [0, 0, 1, 1], [], []>} : vector<2x32xf32>, vector<32x192xf32>, vector<2x192xf32> -> vector<2x192xf32>
    %142 = arith.addf %140, %141 : vector<2x192xf32>
    %143 = vector.extract_strided_slice %1 {offsets = [2, 0, 0], sizes = [1, 2, 32], strides = [1, 1, 1]} : vector<4x2x32xf32> to vector<1x2x32xf32>
    %144 = vector.shape_cast %143 : vector<1x2x32xf32> to vector<2x32xf32>
    %c2 = arith.constant 2 : index
    %c0_45 = arith.constant 0 : index
    %c0_46 = arith.constant 0 : index
    %145 = vector.load %arg7[%c2, %c0_45, %c0_46] : memref<4x2x96xf32, #tpu.memory_space<vmem>>, vector<1x2x96xf32>
    %146 = vector.shape_cast %145 : vector<1x2x96xf32> to vector<2x96xf32>
    %147 = vector.extract_strided_slice %142 {offsets = [0, 0], sizes = [2, 96], strides = [1, 1]} : vector<2x192xf32> to vector<2x96xf32>
    %148 = vector.extract_strided_slice %146 {offsets = [0, 0], sizes = [1, 96], strides = [1, 1]} : vector<2x96xf32> to vector<1x96xf32>
    %149 = vector.shape_cast %148 : vector<1x96xf32> to vector<96xf32>
    %150 = vector.shape_cast %149 : vector<96xf32> to vector<1x96xf32>
    %151 = vector.broadcast %150 : vector<1x96xf32> to vector<2x96xf32>
    %152 = arith.addf %147, %151 : vector<2x96xf32>
    %c2_47 = arith.constant 2 : index
    %c0_48 = arith.constant 0 : index
    %c0_49 = arith.constant 0 : index
    %153 = vector.load %arg6[%c2_47, %c0_48, %c0_49] : memref<4x32x96xf32, #tpu.memory_space<vmem>>, vector<1x32x96xf32>
    %154 = vector.shape_cast %153 : vector<1x32x96xf32> to vector<32x96xf32>
    %cst_50 = arith.constant dense<0.000000e+00> : vector<2x96xf32>
    %155 = tpu.matmul %144, %154, %cst_50 {dimension_numbers = #tpu.dot_dimension_numbers<[1], [0], [0], [1], [0, 0, 1, 1], [], []>} : vector<2x32xf32>, vector<32x96xf32>, vector<2x96xf32> -> vector<2x96xf32>
    %156 = vector.extract_strided_slice %146 {offsets = [1, 0], sizes = [1, 96], strides = [1, 1]} : vector<2x96xf32> to vector<1x96xf32>
    %157 = vector.shape_cast %156 : vector<1x96xf32> to vector<96xf32>
    %158 = vector.shape_cast %157 : vector<96xf32> to vector<1x96xf32>
    %159 = vector.broadcast %158 : vector<1x96xf32> to vector<2x96xf32>
    %160 = arith.addf %155, %159 : vector<2x96xf32>
    %161 = vector.extract_strided_slice %152 {offsets = [0, 0], sizes = [2, 32], strides = [1, 1]} : vector<2x96xf32> to vector<2x32xf32>
    %162 = vector.extract_strided_slice %160 {offsets = [0, 0], sizes = [2, 32], strides = [1, 1]} : vector<2x96xf32> to vector<2x32xf32>
    %163 = arith.addf %161, %162 : vector<2x32xf32>
    %164 = arith.negf %163 : vector<2x32xf32>
    %165 = math.exp %164 : vector<2x32xf32>
    %cst_51 = arith.constant 1.000000e+00 : f32
    %166 = vector.broadcast %cst_51 : f32 to vector<2x32xf32>
    %167 = arith.addf %166, %165 : vector<2x32xf32>
    %168 = arith.divf %166, %167 : vector<2x32xf32>
    %169 = vector.extract_strided_slice %152 {offsets = [0, 32], sizes = [2, 32], strides = [1, 1]} : vector<2x96xf32> to vector<2x32xf32>
    %170 = vector.extract_strided_slice %160 {offsets = [0, 32], sizes = [2, 32], strides = [1, 1]} : vector<2x96xf32> to vector<2x32xf32>
    %171 = arith.addf %169, %170 : vector<2x32xf32>
    %172 = arith.negf %171 : vector<2x32xf32>
    %173 = math.exp %172 : vector<2x32xf32>
    %cst_52 = arith.constant 1.000000e+00 : f32
    %174 = vector.broadcast %cst_52 : f32 to vector<2x32xf32>
    %175 = arith.addf %174, %173 : vector<2x32xf32>
    %176 = arith.divf %174, %175 : vector<2x32xf32>
    %177 = vector.extract_strided_slice %152 {offsets = [0, 64], sizes = [2, 32], strides = [1, 1]} : vector<2x96xf32> to vector<2x32xf32>
    %178 = vector.extract_strided_slice %160 {offsets = [0, 64], sizes = [2, 32], strides = [1, 1]} : vector<2x96xf32> to vector<2x32xf32>
    %179 = arith.mulf %168, %178 : vector<2x32xf32>
    %180 = arith.addf %177, %179 : vector<2x32xf32>
    %181 = math.tanh %180 : vector<2x32xf32>
    %cst_53 = arith.constant 1.000000e+00 : f32
    %182 = vector.broadcast %cst_53 : f32 to vector<2x32xf32>
    %183 = arith.subf %182, %176 : vector<2x32xf32>
    %184 = arith.mulf %183, %181 : vector<2x32xf32>
    %185 = arith.mulf %176, %144 : vector<2x32xf32>
    %186 = arith.addf %184, %185 : vector<2x32xf32>
    %187 = vector.extract_strided_slice %1 {offsets = [3, 0, 0], sizes = [1, 2, 32], strides = [1, 1, 1]} : vector<4x2x32xf32> to vector<1x2x32xf32>
    %188 = vector.shape_cast %187 : vector<1x2x32xf32> to vector<2x32xf32>
    %c3 = arith.constant 3 : index
    %c0_54 = arith.constant 0 : index
    %c0_55 = arith.constant 0 : index
    %189 = vector.load %arg7[%c3, %c0_54, %c0_55] : memref<4x2x96xf32, #tpu.memory_space<vmem>>, vector<1x2x96xf32>
    %190 = vector.shape_cast %189 : vector<1x2x96xf32> to vector<2x96xf32>
    %191 = vector.extract_strided_slice %142 {offsets = [0, 96], sizes = [2, 96], strides = [1, 1]} : vector<2x192xf32> to vector<2x96xf32>
    %192 = vector.extract_strided_slice %190 {offsets = [0, 0], sizes = [1, 96], strides = [1, 1]} : vector<2x96xf32> to vector<1x96xf32>
    %193 = vector.shape_cast %192 : vector<1x96xf32> to vector<96xf32>
    %194 = vector.shape_cast %193 : vector<96xf32> to vector<1x96xf32>
    %195 = vector.broadcast %194 : vector<1x96xf32> to vector<2x96xf32>
    %196 = arith.addf %191, %195 : vector<2x96xf32>
    %c3_56 = arith.constant 3 : index
    %c0_57 = arith.constant 0 : index
    %c0_58 = arith.constant 0 : index
    %197 = vector.load %arg6[%c3_56, %c0_57, %c0_58] : memref<4x32x96xf32, #tpu.memory_space<vmem>>, vector<1x32x96xf32>
    %198 = vector.shape_cast %197 : vector<1x32x96xf32> to vector<32x96xf32>
    %cst_59 = arith.constant dense<0.000000e+00> : vector<2x96xf32>
    %199 = tpu.matmul %188, %198, %cst_59 {dimension_numbers = #tpu.dot_dimension_numbers<[1], [0], [0], [1], [0, 0, 1, 1], [], []>} : vector<2x32xf32>, vector<32x96xf32>, vector<2x96xf32> -> vector<2x96xf32>
    %200 = vector.extract_strided_slice %190 {offsets = [1, 0], sizes = [1, 96], strides = [1, 1]} : vector<2x96xf32> to vector<1x96xf32>
    %201 = vector.shape_cast %200 : vector<1x96xf32> to vector<96xf32>
    %202 = vector.shape_cast %201 : vector<96xf32> to vector<1x96xf32>
    %203 = vector.broadcast %202 : vector<1x96xf32> to vector<2x96xf32>
    %204 = arith.addf %199, %203 : vector<2x96xf32>
    %205 = vector.extract_strided_slice %196 {offsets = [0, 0], sizes = [2, 32], strides = [1, 1]} : vector<2x96xf32> to vector<2x32xf32>
    %206 = vector.extract_strided_slice %204 {offsets = [0, 0], sizes = [2, 32], strides = [1, 1]} : vector<2x96xf32> to vector<2x32xf32>
    %207 = arith.addf %205, %206 : vector<2x32xf32>
    %208 = arith.negf %207 : vector<2x32xf32>
    %209 = math.exp %208 : vector<2x32xf32>
    %cst_60 = arith.constant 1.000000e+00 : f32
    %210 = vector.broadcast %cst_60 : f32 to vector<2x32xf32>
    %211 = arith.addf %210, %209 : vector<2x32xf32>
    %212 = arith.divf %210, %211 : vector<2x32xf32>
    %213 = vector.extract_strided_slice %196 {offsets = [0, 32], sizes = [2, 32], strides = [1, 1]} : vector<2x96xf32> to vector<2x32xf32>
    %214 = vector.extract_strided_slice %204 {offsets = [0, 32], sizes = [2, 32], strides = [1, 1]} : vector<2x96xf32> to vector<2x32xf32>
    %215 = arith.addf %213, %214 : vector<2x32xf32>
    %216 = arith.negf %215 : vector<2x32xf32>
    %217 = math.exp %216 : vector<2x32xf32>
    %cst_61 = arith.constant 1.000000e+00 : f32
    %218 = vector.broadcast %cst_61 : f32 to vector<2x32xf32>
    %219 = arith.addf %218, %217 : vector<2x32xf32>
    %220 = arith.divf %218, %219 : vector<2x32xf32>
    %221 = vector.extract_strided_slice %196 {offsets = [0, 64], sizes = [2, 32], strides = [1, 1]} : vector<2x96xf32> to vector<2x32xf32>
    %222 = vector.extract_strided_slice %204 {offsets = [0, 64], sizes = [2, 32], strides = [1, 1]} : vector<2x96xf32> to vector<2x32xf32>
    %223 = arith.mulf %212, %222 : vector<2x32xf32>
    %224 = arith.addf %221, %223 : vector<2x32xf32>
    %225 = math.tanh %224 : vector<2x32xf32>
    %cst_62 = arith.constant 1.000000e+00 : f32
    %226 = vector.broadcast %cst_62 : f32 to vector<2x32xf32>
    %227 = arith.subf %226, %220 : vector<2x32xf32>
    %228 = arith.mulf %227, %225 : vector<2x32xf32>
    %229 = arith.mulf %220, %188 : vector<2x32xf32>
    %230 = arith.addf %228, %229 : vector<2x32xf32>
    %231 = vector.shape_cast %91 : vector<2x32xf32> to vector<1x2x32xf32>
    %232 = vector.shape_cast %135 : vector<2x32xf32> to vector<1x2x32xf32>
    %233 = vector.shape_cast %186 : vector<2x32xf32> to vector<1x2x32xf32>
    %234 = vector.shape_cast %230 : vector<2x32xf32> to vector<1x2x32xf32>
    %235 = tpu.concatenate %231, %232, %233, %234 in 0 : vector<1x2x32xf32>, vector<1x2x32xf32>, vector<1x2x32xf32>, vector<1x2x32xf32> -> vector<4x2x32xf32>
    %c0_63 = arith.constant 0 : index
    %c0_64 = arith.constant 0 : index
    %c0_65 = arith.constant 0 : index
    %236 = vector.load %arg11[%c0_63, %c0_64, %c0_65] : memref<4x2x32xf32, #tpu.memory_space<vmem>>, vector<4x2x32xf32>
    tpu.vector_store %arg11[%c0_63, %c0_64, %c0_65], %235 {strides = array<i32>} : memref<4x2x32xf32, #tpu.memory_space<vmem>>, vector<4x2x32xf32>,
    %c0_66 = arith.constant 0 : index
    %c0_67 = arith.constant 0 : index
    %237 = vector.load %arg8[%c0_66, %c0_67] : memref<64x128xf32, #tpu.memory_space<vmem>>, vector<64x128xf32>
    %238 = vector.extract_strided_slice %237 {offsets = [0, 0], sizes = [32, 128], strides = [1, 1]} : vector<64x128xf32> to vector<32x128xf32>
    %cst_68 = arith.constant dense<0.000000e+00> : vector<2x128xf32>
    %239 = tpu.matmul %186, %238, %cst_68 {dimension_numbers = #tpu.dot_dimension_numbers<[1], [0], [0], [1], [0, 0, 1, 1], [], []>} : vector<2x32xf32>, vector<32x128xf32>, vector<2x128xf32> -> vector<2x128xf32>
    %240 = vector.extract_strided_slice %237 {offsets = [32, 0], sizes = [32, 128], strides = [1, 1]} : vector<64x128xf32> to vector<32x128xf32>
    %cst_69 = arith.constant dense<0.000000e+00> : vector<2x128xf32>
    %241 = tpu.matmul %230, %240, %cst_69 {dimension_numbers = #tpu.dot_dimension_numbers<[1], [0], [0], [1], [0, 0, 1, 1], [], []>} : vector<2x32xf32>, vector<32x128xf32>, vector<2x128xf32> -> vector<2x128xf32>
    %242 = arith.addf %239, %241 : vector<2x128xf32>
    %c0_70 = arith.constant 0 : index
    %c0_71 = arith.constant 0 : index
    %243 = vector.load %arg9[%c0_70, %c0_71] : memref<1x128xf32, #tpu.memory_space<vmem>>, vector<1x128xf32>
    %244 = vector.shape_cast %243 : vector<1x128xf32> to vector<128xf32>
    %245 = vector.shape_cast %244 : vector<128xf32> to vector<1x128xf32>
    %246 = vector.broadcast %245 : vector<1x128xf32> to vector<2x128xf32>
    %247 = arith.addf %242, %246 : vector<2x128xf32>
    %c0_72 = arith.constant 0 : index
    %c0_73 = arith.constant 0 : index
    %248 = vector.load %arg10[%c0_72, %c0_73] : memref<2x128xf32, #tpu.memory_space<vmem>>, vector<2x128xf32>
    tpu.vector_store %arg10[%c0_72, %c0_73], %247 {strides = array<i32>} : memref<2x128xf32, #tpu.memory_space<vmem>>, vector<2x128xf32>,
    return
  }
}

</mosaic_0001>

<bundles_post_ra>
// kernel: tpu_custom_call.1
= control target key start
LH: loop header
LB: loop body
LE: loop exit
PB: predicated region body
PF: predicated region fallthrough
CT: control target
= control target key end

     0   :  { %17 = vsyncpa [#allocation3], 0  ;;  %s2389_s0 = inlined_call_operand.vmem [shape: f32[2,32], index: 0, kind: input, shape index: {}]   ;;  %s2390_s1 = inlined_call_operand.vmem [shape: f32[4,2,32], index: 1, kind: input, shape index: {}]   ;;  %s2391_s2 = inlined_call_operand.hbm [shape: f32[2,8,64], index: 2, kind: input, shape index: {}]   ;;  %s2392_s3 = inlined_call_operand.vmem [shape: f32[96,32], index: 3, kind: input, shape index: {}]   ;;  %s2393_s4 = inlined_call_operand.hbm [shape: f32[2,32], index: 4, kind: input, shape index: {}]   ;;  %s2394_s5 = inlined_call_operand.hbm [shape: f32[2,96,192], index: 5, kind: input, shape index: {}]   ;;  %s2395_s6 = inlined_call_operand.vmem [shape: f32[4,32,96], index: 6, kind: input, shape index: {}]   ;;  %s2396_s7 = inlined_call_operand.hbm [shape: f32[4,2,96], index: 7, kind: input, shape index: {}]   ;;  %s2397_s8 = inlined_call_operand.hbm [shape: f32[64,128], index: 8, kind: input, shape index: {}]   ;;  %s2398_s9 = inlined_call_operand.vmem [shape: f32[1,128], index: 9, kind: input, shape index: {}]   ;;  %s2399_s10 = inlined_call_operand.hbm [shape: f32[2,128], index: 10, kind: output, shape index: {0}]   ;;  %s2400_s11 = inlined_call_operand.hbm [shape: f32[4,2,32], index: 11, kind: output, shape index: {1}]  }
   0x1   :  { %18 = vsyncpa [#allocation6], 0 }
   0x2   :  { %19 = vsyncpa [#allocation9], 0 }
   0x3   :  { %20 = vsyncpa [#allocation4], 0 }
   0x4   :  { %21 = vsyncpa [#allocation13], 0  ;;  %s2018_s17 = smov [#allocation5]   ;;  %s2019_s19 = smov [#allocation8]  }
   0x5   :  { %s46_s18 = sshll.u32 %s2018_s17, 4  ;;  %s69_s20 = sshll.u32 %s2019_s19, 4  ;;  %s47_s18 = int_to_ptr.vmem [resolvable:$true] %s46_s18  ;;  %s70_s20 = int_to_ptr.vmem [resolvable:$true] %s69_s20 }
   0x6   :  { %s1876_s21 = scalar_lea.vmem %s47_s18, 32  ;;  %p1881_p1 = scmp.lt.s32.totalorder %s47_s18, %s47_s18 }
   0x7   :  { %p1877_p0 = scmp.ne.s32.totalorder %s47_s18, %s1876_s21  ;;  %p1882_p2 = scmp.lt.s32.totalorder %s1876_s21, %s1876_s21 }
   0x9   :  { %p1883_p3 = por %p1882_p2, %p1881_p1 }
   0xb   :  { %p1884_p4 = pnand %p1883_p3, %p1877_p0 }
   0xd   :  { %1887 = shalt.err (!%p1884_p4)
}
   0xe   :  { %49 = dma.hbm_to_vmem [thread:$0]  %s2393_s4, 32, %s47_s18, [#allocation6]  }
   0xf   :  { %s1896_s24 = scalar_lea.vmem %s70_s20, 128  ;;  %p1901_p6 = scmp.lt.s32.totalorder %s70_s20, %s70_s20 }
  0x10   :  { %p1897_p5 = scmp.ne.s32.totalorder %s70_s20, %s1896_s24  ;;  %p1902_p7 = scmp.lt.s32.totalorder %s1896_s24, %s1896_s24 }
  0x12   :  { %p1903_p8 = por %p1902_p7, %p1901_p6 }
  0x14   :  { %p1904_p9 = pnand %p1903_p8, %p1897_p5 }
  0x16   :  { %1907 = shalt.err (!%p1904_p9)
}
  0x17   :  { %s2020_s25 = smov 32   ;;  %s2021_s26 = smov 2  }
  0x18   :  { %75 = dma.hbm_to_vmem [thread:$0]  %s2396_s7, 128, %s70_s20, [#allocation9], %s2020_s25, %s2020_s25, %s2021_s26  }
  0x19   :  { %s2022_s29 = smov [#allocation2]  }
  0x1a   :  { %s31_s30 = sshll.u32 %s2022_s29, 4  ;;  %s32_s30 = int_to_ptr.vmem [resolvable:$true] %s31_s30 }
  0x1b   :  { %s1916_s4 = scalar_lea.vmem %s32_s30, 256  ;;  %p1921_p11 = scmp.lt.s32.totalorder %s32_s30, %s32_s30 }
  0x1c   :  { %p1917_p10 = scmp.ne.s32.totalorder %s32_s30, %s1916_s4  ;;  %p1922_p12 = scmp.lt.s32.totalorder %s1916_s4, %s1916_s4 }
  0x1e   :  { %p1923_p13 = por %p1922_p12, %p1921_p11 }
  0x20   :  { %p1924_p0 = pnand %p1923_p13, %p1917_p10 }
  0x22   :  { %1927 = shalt.err (!%p1924_p0)
}
  0x23   :  { %s2023_s12 = smov 128   ;;  %s2024_s13 = smov 8  }
  0x24   :  { %37 = dma.hbm_to_vmem [thread:$0]  %s2391_s2, 256, %s32_s30, [#allocation3], %s2023_s12, %s2023_s12, %s2024_s13  }
  0x25   :  { %s2025_s16 = smov [#allocation7]  }
  0x26   :  { %s55_s17 = sshll.u32 %s2025_s16, 4  ;;  %s56_s17 = int_to_ptr.vmem [resolvable:$true] %s55_s17 }
  0x27   :  { %s1936_s7 = scalar_lea.vmem %s56_s17, 6144  ;;  %p1941_p2 = scmp.lt.s32.totalorder %s56_s17, %s56_s17 }
  0x28   :  { %p1937_p1 = scmp.ne.s32.totalorder %s56_s17, %s1936_s7  ;;  %p1942_p3 = scmp.lt.s32.totalorder %s1936_s7, %s1936_s7 }
  0x2a   :  { %p1943_p4 = por %p1942_p3, %p1941_p2 }
  0x2c   :  { %p1944_p5 = pnand %p1943_p4, %p1937_p1 }
  0x2e   :  { %1947 = shalt.err (!%p1944_p5)
}
  0x2f   :  { %s2026_s18 = smov 256   ;;  %s2027_s19 = smov 16  }
  0x30   :  { %61 = dma.hbm_to_vmem [thread:$0]  %s2394_s5, 6144, %s56_s17, [#allocation6], %s2026_s18, %s2026_s18, %s2027_s19  }
  0x31   :  { %s2028_s22 = smov [#allocation10]  }
  0x32   :  { %s81_s23 = sshll.u32 %s2028_s22, 4  ;;  %s82_s23 = int_to_ptr.vmem [resolvable:$true] %s81_s23 }
  0x33   :  { %s1956_s2 = scalar_lea.vmem %s82_s23, 1024  ;;  %p1961_p7 = scmp.lt.s32.totalorder %s82_s23, %s82_s23 }
  0x34   :  { %p1957_p6 = scmp.ne.s32.totalorder %s82_s23, %s1956_s2  ;;  %p1962_p8 = scmp.lt.s32.totalorder %s1956_s2, %s1956_s2 }
  0x36   :  { %p1963_p9 = por %p1962_p8, %p1961_p7 }
  0x38   :  { %p1964_p10 = pnand %p1963_p9, %p1957_p6 }
  0x3a   :  { %1967 = shalt.err (!%p1964_p10)
}
  0x3b   :  { %87 = dma.hbm_to_vmem [thread:$0]  %s2397_s8, 1024, %s82_s23, [#allocation9], %s2023_s12, %s2023_s12, %s2024_s13  }
  0x3c   :  { %2008 = dma.done.wait [#allocation3], 256  }
  0x3d   :  { %2009 = vsyncadd [#allocation3], 4294967040 }
  0x3e   :  { %2010 = dma.done.wait [#allocation6], 6176  }
  0x3f   :  { %2011 = vsyncadd [#allocation6], 4294961120 }
  0x40   :  { %2012 = dma.done.wait [#allocation9], 1152  }
  0x41   :  { %2013 = vsyncadd [#allocation9], 4294966144  ;;  %v2029_v0 = vmov 0.0   ;;  %vm2030_vm0 = vmmov 0   ;;  %v123_v1 = vld [vmem:[%s2392_s3 + $0x58] sm:$0xff]  ;;  %v122_v3 = vld [vmem:[%s2392_s3 + $0x50] sm:$0xff]  ;;  %v285_v16 = vlaneseq }
  0x42   :  { %1699 = vmatprep.subr.mxu0 %v2029_v0  ;;  %1707 = vmatprep.mubr.msk.f32.mxu0 %vm2030_vm0, %v2029_v0  ;;  %v115_v2 = vld [vmem:[%s2392_s3 + $0x18] sm:$0xff]  ;;  %v114_v4 = vld [vmem:[%s2392_s3 + $0x10] sm:$0xff]  ;;  %v121_v5 = vld [vmem:[%s2392_s3 + $0x48] sm:$0xff]  ;;  %vm125_vm1 = vcmask 261120   ;;  %vm199_vm2 = vcmask 523264   ;;  %vm348_vm3 = vcmask 1041409  }
  0x43   :  { %1710 = vmatprep.subr.mxu1 %v123_v1  ;;  %1700 = vmatpush3.msra.mxu0 %v115_v2  ;;  %v113_v6 = vld [vmem:[%s2392_s3 + $0x8] sm:$0xff]  ;;  %v120_v7 = vld [vmem:[%s2392_s3 + $0x40] sm:$0xff]  ;;  %v119_v10 = vld [vmem:[%s2392_s3 + $0x38] sm:$0xff]  ;;  %v286_v17 = vshrl.u32 %v285_v16, 7  ;;  %v339_v18 = vand.u32 127, %v285_v16  ;;  %vm351_vm4 = vcmask 58368  }
  0x44   :  { %1711 = vmatpush3.msra.mxu1 %v123_v1  ;;  %1701 = vmatprep.subr.mxu0 %v2029_v0  ;;  %v112_v8 = vld [vmem:[%s2392_s3] sm:$0xff]  ;;  %v118_v12 = vld [vmem:[%s2392_s3 + $0x30] sm:$0xff]  ;;  %v117_v13 = vld [vmem:[%s2392_s3 + $0x28] sm:$0xff]  ;;  %v2031_v20 = vmov 1966171168   ;;  %v2032_v55 = vmov 0  }
  0x45   :  { %1712 = vmatprep.subr.mxu1 %v122_v3  ;;  %1702 = vmatpush3.msra.mxu0 %v114_v4  ;;  %v2147_v9 = vld [vmem:[%s2390_s1 + $0x6] sm:$0x3]  ;;  %v111_v14 = vld [vmem:[#allocation2 + $0x8] sm:$0xff]  ;;  %v2172_v19 = vsub.s32 %v339_v18, %v286_v17  ;;  %v283_v21 = vunpack.c.l.s4 %v2031_v20  ;;  %v2174_v28 = vsub.s32 0, %v286_v17  ;;  %v124_v30 = vld [vmem:[#allocation5] sm:$0x3] }
  0x46   :  { %1713 = vmatpush3.msra.mxu1 %v122_v3  ;;  %1703 = vmatprep.subr.mxu0 %v2029_v0  ;;  %v110_v11 = vld [vmem:[#allocation2] sm:$0xff]  ;;  %v2179_v41 = vsub.s32 1, %v286_v17  ;;  %v591_v16 = vld [vmem:[#allocation7 + $0xb8] sm:$0xff]  ;;  %vm415_vm5 = vcmask 64512   ;;  %s2033_s19 = smov 96   ;;  %s2034_s30 = smov 64  }
  0x47   :  { %1714 = vmatprep.subr.mxu1 %v121_v5  ;;  %1704 = vmatpush3.msra.mxu0 %v113_v6  ;;  %v116_v15 = vld [vmem:[%s2392_s3 + $0x20] sm:$0xff]  ;;  %v284_v22 = vunpack.c.0.s8 %v283_v21  ;;  %v319_v33 = vrot.slane %v124_v30, %v2174_v28  ;;  %vm1417_vm6 = vcmask 254976  }
  0x48   :  { %1715 = vmatpush3.msra.mxu1 %v121_v5  ;;  %1705 = vmatprep.subr.mxu0 %v2029_v0  ;;  %v327_v43 = vrot.slane %v124_v30, %v2179_v41  ;;  %v590_v20 = vld [vmem:[#allocation7 + $0xb0] sm:$0xff]  ;;  %v589_v21 = vld [vmem:[#allocation7 + $0xa8] sm:$0xff]  ;;  %v572_v30 = vld [vmem:[#allocation7 + $0x20] sm:$0xff] }
  0x49   :  { %1716 = vmatprep.subr.mxu1 %v120_v7  ;;  %1706 = vmatpush3.msra.mxu0 %v112_v8  ;;  %v287_v23 = vsub.s32 %v284_v22, %v286_v17  ;;  %v588_v22 = vld [vmem:[#allocation7 + $0xa0] sm:$0xff] }
  0x4a   :  { %1717 = vmatpush3.msra.mxu1 %v120_v7  ;;  %1708 = vmatmul.mubr.msk.f32.vlgmr.msra.gmra.mxu0 %vm125_vm1, %v2147_v9 }
  0x4b   :  { %1718 = vmatprep.subr.mxu1 %v119_v10  ;;  %1726 = vmatprep.mubr.msk.f32.mxu1 %vm199_vm2, %v110_v11 }
  0x4c   :  { %1719 = vmatpush3.msra.mxu1 %v119_v10  ;;  %1734 = vmatprep.subr.mxu0 %v2029_v0 }
  0x4d   :  { %1720 = vmatprep.subr.mxu1 %v118_v12  ;;  %1735 = vmatpush3.msra.mxu0 %v111_v14 }
  0x4e   :  { %1721 = vmatpush3.msra.mxu1 %v118_v12  ;;  %1736 = vmatprep.mubr.msk.f32.mxu0 %vm2030_vm0, %v2029_v0 }
  0x4f   :  { %1722 = vmatprep.subr.mxu1 %v117_v13  ;;  %1825 = vset.pattern.permute.xlu0 %v2032_v55 }
  0x50   :  { %1723 = vmatpush3.msra.mxu1 %v117_v13  ;;  %1824 = vset.pattern.permute.xlu1 %v2032_v55 }
  0x51   :  { %1724 = vmatprep.subr.mxu1 %v116_v15  ;;  %614 = vmatprep.subr.mxu0 %v591_v16 }
  0x52   :  { %1725 = vmatpush3.msra.mxu1 %v116_v15  ;;  %v575_v15 = vld [vmem:[#allocation7 + $0x38] sm:$0xff] }
  0x53   :  { %1727 = vmatmul.mubr.msk.f32.vlgmr.msra.gmra.mxu1 %vm199_vm2, %v111_v14  ;;  %1729 = vmatprep.subr.mxu1 %v2029_v0 }
  0x54   :  { %1730 = vmatpush3.msra.mxu1 %v110_v11  ;;  %1731 = vmatprep.mubr.msk.f32.mxu1 %vm2030_vm0, %v2029_v0 }
  0x55   :  { %696 = vmatprep.subr.mxu1 %v575_v15 }
 0x10a   :  { %v195_v24 = vpop.f32.mrf.mxu0 }
 0x10b   :  { %v288_v25 = vrot.slane %v195_v24, %v287_v23  ;;  %v587_v24 = vld [vmem:[#allocation7 + $0x98] sm:$0xff] }
 0x10c   :  { %v1709_v26 = vpop.f32.mrf.mxu0 }
 0x10d   :  { %v289_v27 = vcombine.high %v288_v25, %v288_v25  ;;  %v296_v29 = vrot.slane %v288_v25, %v287_v23  ;;  %v574_v26 = vld [vmem:[#allocation7 + $0x30] sm:$0xff] }
 0x10f   :  { %v303_v31 = vrot.slane %v289_v27, %v287_v23  ;;  %v307_v34 = vrot.slane %v296_v29, %v2174_v28  ;;  %v573_v27 = vld [vmem:[#allocation7 + $0x28] sm:$0xff]  ;;  %v586_v29 = vld [vmem:[#allocation7 + $0x90] sm:$0xff] }
 0x111   :  { %v311_v32 = vrot.slane %v303_v31, %v2174_v28  ;;  %v585_v31 = vld [vmem:[#allocation7 + $0x88] sm:$0xff] }
 0x113   :  { %v1728_v35 = vpop.f32.mrf.mxu1 }
 0x114   :  { %v315_v36 = vadd.f32 %v1728_v35, %v311_v32  ;;  %v571_v32 = vld [vmem:[#allocation7 + $0x18] sm:$0xff] }
 0x115   :  { %v272_v37 = vpop.f32.mrf.mxu1  ;;  %v583_v35 = vld [vmem:[#allocation7 + $0x78] sm:$0xff] }
 0x116   :  { %v321_v38 = vadd.f32 %v319_v33, %v315_v36  ;;  %v314_v39 = vadd.f32 %v307_v34, %v272_v37  ;;  %v570_v34 = vld [vmem:[#allocation7 + $0x10] sm:$0xff]  ;;  %v568_v37 = vld [vmem:[#allocation7] sm:$0xff] }
 0x117   :  { %v582_v36 = vld [vmem:[#allocation7 + $0x70] sm:$0xff] }
 0x118   :  { %v320_v40 = vadd.f32 %v319_v33, %v314_v39  ;;  %1826 = vtanh.f32 %v321_v38  ;;  %v584_v33 = vld [vmem:[#allocation7 + $0x80] sm:$0xff]  ;;  %v581_v38 = vld [vmem:[#allocation7 + $0x68] sm:$0xff] }
 0x119   :  { %v105_v39 = vld [vmem:[%s2389_s0] sm:$0x3] }
 0x11a   :  { %1828 = vtanh.f32 %v320_v40  ;;  %v752_v40 = vld [vmem:[%s2395_s6 + $0x18] sm:$0xff] }
 0x125   :  { %v1827_v42 = vpop.eup %1826 }
 0x126   :  { %v329_v47 = vmul.f32 %v1827_v42, %v327_v43  ;;  %v751_v42 = vld [vmem:[%s2395_s6 + $0x10] sm:$0xff] }
 0x127   :  { %v1829_v44 = vpop.eup %1828 }
 0x128   :  { %v328_v45 = vmul.f32 %v1829_v44, %v327_v43  ;;  %v333_v48 = vsel %vm125_vm1, %v329_v47, 0.0  ;;  %v750_v43 = vld [vmem:[%s2395_s6 + $0x8] sm:$0xff]  ;;  %v749_v44 = vld [vmem:[%s2395_s6] sm:$0xff] }
 0x129   :  { %v579_v47 = vld [vmem:[#allocation7 + $0x58] sm:$0xff] }
 0x12a   :  { %v330_v46 = vsel %vm125_vm1, %v328_v45, 0.0  ;;  %v2226_v45 = vld [vmem:[%s2390_s1] sm:$0x3] }
 0x12b   :  { %331 = vadd.xlane.f32.xlu0 %v330_v46  ;;  %v580_v46 = vld [vmem:[#allocation7 + $0x60] sm:$0xff] }
 0x12f   :  { %334 = vadd.xlane.f32.xlu0 %v333_v48  ;;  %v578_v48 = vld [vmem:[#allocation7 + $0x50] sm:$0xff] }
 0x1b4   :  { %v332_v49 = vpop.xlane.xlu0 %331 }
 0x1b5   :  { %v343_v51 = vrot.slane %v332_v49, %v2172_v19 }
 0x1b8   :  { %v335_v50 = vpop.xlane.xlu0 %334 }
 0x1b9   :  { %v347_v52 = vrot.slane %v335_v50, %v2172_v19 }
 0x1bb   :  { %v349_v53 = vsel %vm348_vm3, %v347_v52, %v343_v51  ;;  %v860_v51 = vld [vmem:[#allocation8 + $0x2] sm:$0x3] }
 0x1bc   :  { %v352_v54 = vsel %vm351_vm4, %v349_v53, -inf  ;;  %v864_v52 = vrot.slane %v860_v51, %v2174_v28 }
 0x1bd   :  { %353 = vmax.xlane.f32.xlu1 %v352_v54 }
 0x246   :  { %v354_v56 = vpop.xlane.xlu1 %353 }
 0x247   :  { %v359_v57 = vrot.slane %v354_v56, %v2174_v28  ;;  %v363_v58 = vrot.slane %v354_v56, %v2179_v41 }
 0x249   :  { %v366_v59 = vsub.f32 %v332_v49, %v359_v57  ;;  %v367_v60 = vsub.f32 %v335_v50, %v363_v58  ;;  %v577_v49 = vld [vmem:[#allocation7 + $0x48] sm:$0xff]  ;;  %v576_v50 = vld [vmem:[#allocation7 + $0x40] sm:$0xff] }
 0x24a   :  { %v1628_v57 = vld [vmem:[%s2395_s6 + $0x38] sm:$0xff] }
 0x24b   :  { %v368_v61 = vmul.f32 1.442695, %v366_v59  ;;  %v370_v62 = vmul.f32 1.442695, %v367_v60  ;;  %v1627_v60 = vld [vmem:[%s2395_s6 + $0x30] sm:$0xff] }
 0x24d   :  { %1830 = vpow2.f32 %v368_v61  ;;  %v1626_v61 = vld [vmem:[%s2395_s6 + $0x28] sm:$0xff] }
 0x24e   :  { %1832 = vpow2.f32 %v370_v62  ;;  %v1625_v62 = vld [vmem:[%s2395_s6 + $0x20] sm:$0xff] }
 0x25a   :  { %v1831_v63 = vpop.eup %1830 }
 0x25b   :  { %v1833_v1 = vpop.eup %1832  ;;  %375 = vperm.xlu1 %1824, %v1831_v63  }
 0x25c   :  { %378 = vperm.xlu0 %1825, %v1833_v1  }
 0x2d6   :  { %v376_v2 = vpop.permute.xlu1 %375 }
 0x2d7   :  { %v379_v3 = vpop.permute.xlu0 %378  ;;  %v383_v4 = vrot.slane %v376_v2, %v2172_v19  ;;  %v743_v2 = vld [vmem:[#allocation8] sm:$0x3] }
 0x2d8   :  { %v387_v5 = vrot.slane %v379_v3, %v2172_v19 }
 0x2da   :  { %v388_v6 = vsel %vm348_vm3, %v387_v5, %v383_v4  ;;  %v756_v4 = vrot.slane %v743_v2, %v2179_v41 }
 0x2db   :  { %v390_v7 = vsel %vm351_vm4, %v388_v6, 0.0 }
 0x2dc   :  { %391 = vadd.xlane.f32.xlu1 %v390_v7 }
 0x2ed   :  { %866 = vrot.lane.b32.xlu1 %v864_v52, %s2033_s19 }
 0x365   :  { %v392_v8 = vpop.xlane.xlu1 %391 }
 0x366   :  { %1834 = vrcp.f32 %v392_v8  ;;  %v747_v8 = vrot.slane %v743_v2, %v2174_v28 }
 0x373   :  { %v1835_v10 = vpop.eup %1834 }
 0x374   :  { %v402_v11 = vrot.slane %v1835_v10, %v2179_v41  ;;  %v398_v13 = vrot.slane %v1835_v10, %v2174_v28 }
 0x376   :  { %v406_v12 = vmul.f32 %v1833_v1, %v402_v11  ;;  %v405_v14 = vmul.f32 %v1831_v63, %v398_v13  ;;  %v2256_v63 = vld [vmem:[%s2390_s1 + $0x2] sm:$0x3] }
 0x378   :  { %490 = vperm.xlu0 %1825, %v406_v12  }
 0x37c   :  { %409 = vperm.xlu0 %1825, %v405_v14   ;;  %v879_v14 = vrot.slane %v860_v51, %v2179_v41  ;;  %v990_v51 = vld [vmem:[#allocation7 + $0xc0] sm:$0xff] }
 0x3f3   :  { %v491_v17 = vpop.permute.xlu0 %490 }
 0x3f4   :  { %v495_v18 = vrot.slane %v491_v17, %v2172_v19 }
 0x3f6   :  { %1737 = vmatmul.mubr.msk.f32.vlgmr.msra.gmra.mxu0 %vm415_vm5, %v495_v18 }
 0x3f7   :  { %v410_v23 = vpop.permute.xlu0 %409  ;;  %615 = vmatpush1.msra.mxu0 %v590_v20  ;;  %662 = vmatprep.mubr.f32.mxu0 %v2029_v0 }
 0x3f8   :  { %v414_v25 = vrot.slane %v410_v23, %v2172_v19  ;;  %616 = vmatprep.subr.mxu0 %v589_v21  ;;  %v569_v19 = vld [vmem:[#allocation7 + $0x8] sm:$0xff] }
 0x3f9   :  { %617 = vmatpush1.msra.mxu0 %v588_v22 }
 0x3fa   :  { %1732 = vmatmul.mubr.msk.f32.vlgmr.msra.gmra.mxu1 %vm415_vm5, %v414_v25  ;;  %618 = vmatprep.subr.mxu0 %v587_v24 }
 0x3fb   :  { %697 = vmatpush1.msra.mxu1 %v574_v26  ;;  %736 = vmatprep.mubr.f32.mxu1 %v2029_v0  ;;  %v867_v26 = vpop.permute.xlu1 %866 }
 0x3fc   :  { %698 = vmatprep.subr.mxu1 %v573_v27  ;;  %619 = vmatpush1.msra.mxu0 %v586_v29 }
 0x3fd   :  { %699 = vmatpush1.msra.mxu1 %v572_v30  ;;  %620 = vmatprep.subr.mxu0 %v585_v31 }
 0x3fe   :  { %700 = vmatprep.subr.mxu1 %v571_v32  ;;  %621 = vmatpush1.msra.mxu0 %v584_v33 }
 0x3ff   :  { %701 = vmatpush1.msra.mxu1 %v570_v34  ;;  %622 = vmatprep.subr.mxu0 %v583_v35 }
 0x400   :  { %702 = vmatprep.subr.mxu1 %v569_v19  ;;  %623 = vmatpush1.msra.mxu0 %v582_v36 }
 0x401   :  { %703 = vmatpush1.msra.mxu1 %v568_v37  ;;  %624 = vmatprep.subr.mxu0 %v581_v38  ;;  %v997_v38 = vld [vmem:[#allocation7 + $0xf8] sm:$0xff] }
 0x402   :  { %1739 = vmatprep.subr.mxu1 %v2029_v0  ;;  %1622 = vmatmul.mubr.msk.f32.vlgmr.msra.gmra.mxu1 %vm125_vm1, %v105_v39  ;;  %v996_v39 = vld [vmem:[#allocation7 + $0xf0] sm:$0xff] }
 0x403   :  { %1740 = vmatpush3.msra.mxu1 %v752_v40  ;;  %1747 = vmatprep.mubr.msk.f32.mxu1 %vm2030_vm0, %v2029_v0  ;;  %v995_v40 = vld [vmem:[#allocation7 + $0xe8] sm:$0xff] }
 0x404   :  { %1741 = vmatprep.subr.mxu1 %v2029_v0  ;;  %625 = vmatpush1.msra.mxu0 %v580_v46  ;;  %v1004_v46 = vld [vmem:[#allocation7 + $0x130] sm:$0xff] }
 0x405   :  { %1742 = vmatpush3.msra.mxu1 %v751_v42  ;;  %626 = vmatprep.subr.mxu0 %v579_v47  ;;  %v994_v42 = vld [vmem:[#allocation7 + $0xe0] sm:$0xff]  ;;  %v1003_v47 = vld [vmem:[#allocation7 + $0x128] sm:$0xff] }
 0x406   :  { %1743 = vmatprep.subr.mxu1 %v2029_v0  ;;  %627 = vmatpush1.msra.mxu0 %v578_v48  ;;  %v992_v48 = vld [vmem:[#allocation7 + $0xd0] sm:$0xff] }
 0x407   :  { %1744 = vmatpush3.msra.mxu1 %v750_v43  ;;  %628 = vmatprep.subr.mxu0 %v577_v49  ;;  %v1005_v43 = vld [vmem:[#allocation7 + $0x138] sm:$0xff]  ;;  %v1002_v49 = vld [vmem:[#allocation7 + $0x120] sm:$0xff] }
 0x408   :  { %1745 = vmatprep.subr.mxu1 %v2029_v0  ;;  %629 = vmatpush1.msra.mxu0 %v576_v50  ;;  %v991_v50 = vld [vmem:[#allocation7 + $0xc8] sm:$0xff] }
 0x409   :  { %1746 = vmatpush3.msra.mxu1 %v749_v44  ;;  %1750 = vmatprep.subr.mxu0 %v2029_v0  ;;  %v993_v44 = vld [vmem:[#allocation7 + $0xd8] sm:$0xff] }
 0x40a   :  { %1748 = vmatmul.mubr.msk.f32.vlgmr.msra.gmra.mxu1 %vm125_vm1, %v2226_v45  ;;  %1033 = vmatprep.subr.mxu1 %v1005_v43 }
 0x40b   :  { %1073 = vmatprep.mubr.f32.mxu1 %v2029_v0  ;;  %1034 = vmatpush1.msra.mxu1 %v1004_v46 }
 0x40c   :  { %1035 = vmatprep.subr.mxu1 %v1003_v47 }
 0x40d   :  { %1036 = vmatpush1.msra.mxu1 %v1002_v49 }
 0x4b6   :  { %v564_v53 = vpop.f32.mrf.mxu0 }
 0x4b7   :  { %v594_v55 = vrot.slane %v564_v53, 7 }
 0x4b8   :  { %v1738_v54 = vpop.f32.mrf.mxu0 }
 0x4ba   :  { %v484_v56 = vpop.f32.mrf.mxu1 }
 0x4bb   :  { %v595_v58 = vsel %vm348_vm3, %v594_v55, %v484_v56  ;;  %v1001_v56 = vld [vmem:[#allocation7 + $0x118] sm:$0xff] }
 0x4bc   :  { %v1733_v59 = vpop.f32.mrf.mxu1  ;;  %1621 = vmatmul.mubr.msk.f32.vlgmr.msra.gmra.mxu0 %vm199_vm2, %v595_v58  ;;  %1037 = vmatprep.subr.mxu1 %v1001_v56  ;;  %v999_v58 = vld [vmem:[#allocation7 + $0x108] sm:$0xff] }
 0x4bd   :  { %1751 = vmatpush3.msra.mxu0 %v1628_v57  ;;  %1758 = vmatprep.mubr.msk.f32.mxu0 %vm2030_vm0, %v2029_v0  ;;  %v1000_v57 = vld [vmem:[#allocation7 + $0x110] sm:$0xff]  ;;  %v998_v59 = vld [vmem:[#allocation7 + $0x100] sm:$0xff] }
 0x4be   :  { %1752 = vmatprep.subr.mxu0 %v2029_v0  ;;  %1038 = vmatpush1.msra.mxu1 %v1000_v57 }
 0x4bf   :  { %1753 = vmatpush3.msra.mxu0 %v1627_v60  ;;  %1039 = vmatprep.subr.mxu1 %v999_v58 }
 0x4c0   :  { %1754 = vmatprep.subr.mxu0 %v2029_v0  ;;  %1040 = vmatpush1.msra.mxu1 %v998_v59 }
 0x4c1   :  { %1755 = vmatpush3.msra.mxu0 %v1626_v61  ;;  %1761 = vmatprep.subr.mxu1 %v2029_v0 }
 0x4c2   :  { %1756 = vmatprep.subr.mxu0 %v2029_v0  ;;  %v738_v1 = vpop.f32.mrf.mxu1 }
 0x4c3   :  { %1757 = vmatpush3.msra.mxu0 %v1625_v62 }
 0x4c4   :  { %1759 = vmatmul.mubr.msk.f32.vlgmr.msra.gmra.mxu0 %vm125_vm1, %v2256_v63  ;;  %v2262_v3 = vpop.f32.mrf.mxu1  ;;  %1109 = vmatprep.subr.mxu0 %v997_v38 }
 0x4c5   :  { %1149 = vmatprep.mubr.f32.mxu0 %v2029_v0  ;;  %1110 = vmatpush1.msra.mxu0 %v996_v39 }
 0x4c6   :  { %1111 = vmatprep.subr.mxu0 %v995_v40 }
 0x4c7   :  { %1112 = vmatpush1.msra.mxu0 %v994_v42 }
 0x4c8   :  { %1113 = vmatprep.subr.mxu0 %v993_v44 }
 0x4c9   :  { %1114 = vmatpush1.msra.mxu0 %v992_v48 }
 0x4ca   :  { %v826_v5 = vpop.f32.mrf.mxu1  ;;  %1115 = vmatprep.subr.mxu0 %v991_v50 }
 0x4cb   :  { %v827_v6 = vadd.f32 %v826_v5, %v756_v4  ;;  %1116 = vmatpush1.msra.mxu0 %v990_v51  ;;  %v2287_v5 = vld [vmem:[#allocation8 + $0x6] sm:$0x3] }
 0x4cc   :  { %v1749_v7 = vpop.f32.mrf.mxu1  ;;  %1772 = vmatprep.subr.mxu0 %v2029_v0 }
 0x4cd   :  { %838 = vrot.lane.b32.xlu0 %v827_v6, %s2034_s30 }
 0x53f   :  { %v839_v23 = vpop.permute.xlu0 %838 }
 0x57c   :  { %v664_v10 = vpop.f32.mrf.mxu0 }
 0x57d   :  { %v739_v11 = vadd.f32 %v738_v1, %v664_v10 }
 0x57e   :  { %v666_v15 = vpop.f32.mrf.mxu0 }
 0x57f   :  { %v748_v12 = vadd.f32 %v747_v8, %v739_v11  ;;  %v869_v27 = vadd.f32 %v867_v26, %v739_v11 }
 0x581   :  { %v830_v13 = vadd.f32 %v827_v6, %v748_v12  ;;  %v1279_v6 = vrot.slane %v2287_v5, %v2174_v28 }
 0x583   :  { %v1624_v16 = vmul.f32 -1.442695, %v830_v13  ;;  %v1643_v13 = vld [vmem:[%s2395_s6 + $0x78] sm:$0xff] }
 0x584   :  { %v949_v17 = vpop.f32.mrf.mxu0 }
 0x585   :  { %1836 = vpow2.f32 %v1624_v16  ;;  %v950_v18 = vadd.f32 %v949_v17, %v879_v14  ;;  %v1642_v16 = vld [vmem:[%s2395_s6 + $0x70] sm:$0xff] }
 0x586   :  { %v1760_v20 = vpop.f32.mrf.mxu0 }
 0x587   :  { %954 = vrot.lane.b32.xlu0 %v950_v18, %s2033_s19 }
 0x58b   :  { %971 = vrot.lane.b32.xlu0 %v950_v18, %s2020_s25 }
 0x592   :  { %v1837_v21 = vpop.eup %1836 }
 0x593   :  { %v834_v22 = vadd.f32 1.0, %v1837_v21  ;;  %v1641_v21 = vld [vmem:[%s2395_s6 + $0x68] sm:$0xff] }
 0x595   :  { %1838 = vrcp.f32 %v834_v22 }
 0x5a2   :  { %v2270_v24 = vpop.eup %1838 }
 0x5a3   :  { %v841_v25 = vmul.f32 %v2270_v24, %v839_v23  ;;  %v848_v61 = vsub.f32 1.0, %v2270_v24  ;;  %v1637_v23 = vld [vmem:[%s2395_s6 + $0x58] sm:$0xff] }
 0x5a5   :  { %843 = vrot.lane.b32.xlu0 %v841_v25, %s2034_s30  ;;  %v1635_v25 = vld [vmem:[%s2395_s6 + $0x48] sm:$0xff] }
 0x5f9   :  { %v2274_v29 = vpop.permute.xlu0 %954 }
 0x5fa   :  { %v957_v30 = vadd.f32 %v2274_v29, %v869_v27  ;;  %v108_v27 = vld [vmem:[%s2390_s1 + $0x4] sm:$0x3]  ;;  %s2035_s1 = smov [#allocation12]  }
 0x5fc   :  { %v1630_v31 = vmul.f32 -1.442695, %v957_v30 }
 0x5fd   :  { %v972_v34 = vpop.permute.xlu0 %971 }
 0x5fe   :  { %1840 = vpow2.f32 %v1630_v31 }
 0x60b   :  { %v1841_v32 = vpop.eup %1840 }
 0x60c   :  { %v961_v33 = vadd.f32 1.0, %v1841_v32 }
 0x60e   :  { %1842 = vrcp.f32 %v961_v33  ;;  %v1294_v33 = vrot.slane %v2287_v5, %v2179_v41 }
 0x617   :  { %v844_v35 = vpop.permute.xlu0 %843 }
 0x618   :  { %v846_v19 = vadd.f32 %v844_v35, %v748_v12 }
 0x61a   :  { %1844 = vtanh.f32 %v846_v19 }
 0x61b   :  { %v1843_v36 = vpop.eup %1842 }
 0x61c   :  { %v974_v37 = vmul.f32 %v1843_v36, %v972_v34 }
 0x61e   :  { %976 = vrot.lane.b32.xlu1 %v974_v37, %s2034_s30 }
 0x622   :  { %854 = vrot.lane.b32.xlu1 %v2226_v45, %s2020_s25  ;;  %v741_v45 = vadd.f32 %v2262_v3, %v666_v15 }
 0x624   :  { %v870_v53 = vadd.f32 %v867_v26, %v741_v45  ;;  %v1634_v26 = vld [vmem:[%s2395_s6 + $0x40] sm:$0xff] }
 0x626   :  { %v964_v7 = vadd.f32 %v2274_v29, %v870_v53  ;;  %v1157_v29 = vld [vmem:[#allocation8 + $0x4] sm:$0x3] }
 0x627   :  { %v1845_v52 = vpop.eup %1844  ;;  %v1161_v31 = vrot.slane %v1157_v29, %v2174_v28  ;;  %v1171_v40 = vrot.slane %v1157_v29, %v2179_v41 }
 0x628   :  { %850 = vrot.lane.b32.xlu0 %v1845_v52, %s2033_s19  ;;  %v1631_v8 = vmul.f32 -1.442695, %v964_v7  ;;  %v1427_v7 = vld [vmem:[#allocation10 + $0x28] sm:$0xff] }
 0x690   :  { %v977_v54 = vpop.permute.xlu1 %976 }
 0x691   :  { %v979_v55 = vadd.f32 %v977_v54, %v870_v53 }
 0x693   :  { %1846 = vtanh.f32 %v979_v55 }
 0x694   :  { %v855_v60 = vpop.permute.xlu1 %854  ;;  %1848 = vpow2.f32 %v1631_v8  ;;  %v1426_v8 = vld [vmem:[#allocation10 + $0x20] sm:$0xff] }
 0x695   :  { %v857_v1 = vmul.f32 %v2270_v24, %v855_v60  ;;  %v1636_v24 = vld [vmem:[%s2395_s6 + $0x50] sm:$0xff] }
 0x69a   :  { %v851_v62 = vpop.permute.xlu0 %850 }
 0x69b   :  { %v853_v2 = vmul.f32 %v851_v62, %v848_v61 }
 0x69d   :  { %v858_v3 = vadd.f32 %v857_v1, %v853_v2  ;;  %v1429_v1 = vld [vmem:[#allocation10 + $0x38] sm:$0xff]  ;;  %v1428_v2 = vld [vmem:[#allocation10 + $0x30] sm:$0xff] }
 0x69f   :  { %1081 = vrot.lane.b32.xlu1 %v858_v3, %s2033_s19 }
 0x6a0   :  { %v1847_v4 = vpop.eup %1846 }
 0x6a1   :  { %983 = vrot.lane.b32.xlu0 %v1847_v4, %s2033_s19  ;;  %v1849_v10 = vpop.eup %1848 }
 0x6a2   :  { %v968_v11 = vadd.f32 1.0, %v1849_v10  ;;  %v1425_v10 = vld [vmem:[#allocation10 + $0x18] sm:$0xff] }
 0x6a3   :  { %1281 = vrot.lane.b32.xlu1 %v1279_v6, %s2033_s19 }
 0x6a4   :  { %1850 = vrcp.f32 %v968_v11  ;;  %v1424_v11 = vld [vmem:[#allocation10 + $0x10] sm:$0xff] }
 0x6b1   :  { %v1851_v12 = vpop.eup %1850 }
 0x6b2   :  { %v981_v15 = vsub.f32 1.0, %v1851_v12  ;;  %v987_v18 = vmul.f32 %v1851_v12, %v2256_v63  ;;  %v1640_v63 = vld [vmem:[%s2395_s6 + $0x60] sm:$0xff]  ;;  %s1598_s6 = sshll.u32 %s2035_s1, 4  ;;  %s1599_s6 = int_to_ptr.vmem [resolvable:$true] %s1598_s6 }
 0x6b3   :  { %v1423_v12 = vld [vmem:[#allocation10 + $0x8] sm:$0xff]  ;;  %s1968_s27 = scalar_lea.vmem %s1599_s6, 128  ;;  %p1973_p12 = scmp.lt.s32.totalorder %s1599_s6, %s1599_s6 }
 0x6b4   :  { %p1969_p11 = scmp.ne.s32.totalorder %s1599_s6, %s1968_s27  ;;  %p1974_p13 = scmp.lt.s32.totalorder %s1968_s27, %s1968_s27 }
 0x6b6   :  { %p1975_p0 = por %p1974_p13, %p1973_p12 }
 0x6b8   :  { %p1976_p1 = pnand %p1975_p0, %p1969_p11 }
 0x711   :  { %v1082_v14 = vpop.permute.xlu1 %1081 }
 0x712   :  { %1418 = vst.msk [vmem:[#allocation12] sm:$0x3] %vm1417_vm6, %v1082_v14  ;;  %1633 = vmatmul.mubr.msk.f32.vlgmr.msra.gmra.mxu0 %vm125_vm1, %v1082_v14 }
 0x713   :  { %v984_v17 = vpop.permute.xlu0 %983  ;;  %1773 = vmatpush3.msra.mxu0 %v1643_v13  ;;  %1780 = vmatprep.mubr.msk.f32.mxu0 %vm2030_vm0, %v2029_v0  ;;  %v1422_v13 = vld [vmem:[#allocation10] sm:$0xff] }
 0x714   :  { %v986_v20 = vmul.f32 %v984_v17, %v981_v15  ;;  %1774 = vmatprep.subr.mxu0 %v2029_v0 }
 0x715   :  { %1775 = vmatpush3.msra.mxu0 %v1642_v16  ;;  %v1282_v51 = vpop.permute.xlu1 %1281 }
 0x716   :  { %v2309_v22 = vadd.f32 %v987_v18, %v986_v20  ;;  %1776 = vmatprep.subr.mxu0 %v2029_v0 }
 0x717   :  { %1777 = vmatpush3.msra.mxu0 %v1641_v21 }
 0x718   :  { %1632 = vmatmul.mubr.msk.f32.vlgmr.msra.gmra.mxu1 %vm125_vm1, %v2309_v22  ;;  %1778 = vmatprep.subr.mxu0 %v2029_v0 }
 0x719   :  { %1762 = vmatpush3.msra.mxu1 %v1637_v23  ;;  %1769 = vmatprep.mubr.msk.f32.mxu1 %vm2030_vm0, %v2029_v0 }
 0x71a   :  { %1763 = vmatprep.subr.mxu1 %v2029_v0  ;;  %1779 = vmatpush3.msra.mxu0 %v1640_v63 }
 0x71b   :  { %1764 = vmatpush3.msra.mxu1 %v1636_v24  ;;  %1781 = vmatmul.mubr.msk.f32.vlgmr.msra.gmra.mxu0 %vm125_vm1, %v2147_v9 }
 0x71c   :  { %1765 = vmatprep.subr.mxu1 %v2029_v0  ;;  %1794 = vmatprep.subr.mxu0 %v2029_v0 }
 0x71d   :  { %1766 = vmatpush3.msra.mxu1 %v1635_v25  ;;  %1802 = vmatprep.mubr.msk.f32.mxu0 %vm2030_vm0, %v2029_v0 }
 0x71e   :  { %1767 = vmatprep.subr.mxu1 %v2029_v0  ;;  %1795 = vmatpush3.msra.mxu0 %v1425_v10 }
 0x71f   :  { %1768 = vmatpush3.msra.mxu1 %v1634_v26  ;;  %1796 = vmatprep.subr.mxu0 %v2029_v0 }
 0x720   :  { %1770 = vmatmul.mubr.msk.f32.vlgmr.msra.gmra.mxu1 %vm125_vm1, %v108_v27  ;;  %1783 = vmatprep.subr.mxu1 %v2029_v0 }
 0x721   :  { %1791 = vmatprep.mubr.msk.f32.mxu1 %vm2030_vm0, %v2029_v0  ;;  %1784 = vmatpush3.msra.mxu1 %v1429_v1 }
 0x722   :  { %1785 = vmatprep.subr.mxu1 %v2029_v0  ;;  %1797 = vmatpush3.msra.mxu0 %v1424_v11 }
 0x723   :  { %1786 = vmatpush3.msra.mxu1 %v1428_v2  ;;  %1798 = vmatprep.subr.mxu0 %v2029_v0 }
 0x724   :  { %1787 = vmatprep.subr.mxu1 %v2029_v0  ;;  %1799 = vmatpush3.msra.mxu0 %v1423_v12 }
 0x725   :  { %1788 = vmatpush3.msra.mxu1 %v1427_v7  ;;  %1800 = vmatprep.subr.mxu0 %v2029_v0 }
 0x726   :  { %1789 = vmatprep.subr.mxu1 %v2029_v0  ;;  %1801 = vmatpush3.msra.mxu0 %v1422_v13 }
 0x727   :  { %1790 = vmatpush3.msra.mxu1 %v1426_v8 }
 0x7d2   :  { %v1151_v30 = vpop.f32.mrf.mxu0 }
 0x7d4   :  { %v1153_v34 = vpop.f32.mrf.mxu0 }
 0x7d8   :  { %v1075_v32 = vpop.f32.mrf.mxu1 }
 0x7d9   :  { %v1152_v35 = vadd.f32 %v1151_v30, %v1075_v32 }
 0x7da   :  { %v1077_v19 = vpop.f32.mrf.mxu1 }
 0x7db   :  { %v1162_v36 = vadd.f32 %v1161_v31, %v1152_v35  ;;  %v1154_v37 = vadd.f32 %v1153_v34, %v1077_v19  ;;  %v1361_v38 = vpop.f32.mrf.mxu0  ;;  %v1284_v45 = vadd.f32 %v1282_v51, %v1152_v35 }
 0x7dc   :  { %v1362_v39 = vadd.f32 %v1361_v38, %v1294_v33 }
 0x7dd   :  { %v1782_v42 = vpop.f32.mrf.mxu0  ;;  %v1285_v4 = vadd.f32 %v1282_v51, %v1154_v37 }
 0x7de   :  { %1383 = vrot.lane.b32.xlu1 %v1362_v39, %s2020_s25 }
 0x7e0   :  { %v1241_v43 = vpop.f32.mrf.mxu1 }
 0x7e1   :  { %v1242_v44 = vadd.f32 %v1241_v43, %v1171_v40 }
 0x7e2   :  { %v1771_v46 = vpop.f32.mrf.mxu1 }
 0x7e3   :  { %1253 = vrot.lane.b32.xlu0 %v1242_v44, %s2034_s30  ;;  %v1245_v28 = vadd.f32 %v1242_v44, %v1162_v36 }
 0x7e5   :  { %v1639_v47 = vmul.f32 -1.442695, %v1245_v28 }
 0x7e7   :  { %1366 = vrot.lane.b32.xlu0 %v1362_v39, %s2033_s19  ;;  %1852 = vpow2.f32 %v1639_v47 }
 0x7f4   :  { %v1853_v48 = vpop.eup %1852 }
 0x7f5   :  { %v1249_v49 = vadd.f32 1.0, %v1853_v48 }
 0x7f7   :  { %1854 = vrcp.f32 %v1249_v49 }
 0x804   :  { %v1855_v50 = vpop.eup %1854 }
 0x805   :  { %v1263_v18 = vsub.f32 1.0, %v1855_v50 }
 0x850   :  { %v1384_v58 = vpop.permute.xlu1 %1383 }
 0x855   :  { %v1254_v52 = vpop.permute.xlu0 %1253 }
 0x856   :  { %v1256_v41 = vmul.f32 %v1855_v50, %v1254_v52 }
 0x858   :  { %1258 = vrot.lane.b32.xlu0 %v1256_v41, %s2034_s30 }
 0x859   :  { %v1367_v53 = vpop.permute.xlu0 %1366 }
 0x85a   :  { %v1369_v54 = vadd.f32 %v1367_v53, %v1284_v45  ;;  %v1376_v15 = vadd.f32 %v1367_v53, %v1285_v4 }
 0x85c   :  { %v1645_v55 = vmul.f32 -1.442695, %v1369_v54  ;;  %v1646_v16 = vmul.f32 -1.442695, %v1376_v15 }
 0x85e   :  { %1856 = vpow2.f32 %v1645_v55 }
 0x86b   :  { %v1857_v56 = vpop.eup %1856 }
 0x86c   :  { %v1373_v57 = vadd.f32 1.0, %v1857_v56 }
 0x86e   :  { %1858 = vrcp.f32 %v1373_v57 }
 0x87b   :  { %v1859_v59 = vpop.eup %1858 }
 0x87c   :  { %v1386_v60 = vmul.f32 %v1859_v59, %v1384_v58 }
 0x87e   :  { %1388 = vrot.lane.b32.xlu1 %v1386_v60, %s2034_s30 }
 0x882   :  { %1269 = vrot.lane.b32.xlu1 %v108_v27, %s2020_s25 }
 0x8ca   :  { %v1259_v61 = vpop.permute.xlu0 %1258 }
 0x8cb   :  { %v1261_v62 = vadd.f32 %v1259_v61, %v1162_v36 }
 0x8cd   :  { %1860 = vtanh.f32 %v1261_v62 }
 0x8da   :  { %v1861_v3 = vpop.eup %1860 }
 0x8db   :  { %1265 = vrot.lane.b32.xlu0 %v1861_v3, %s2033_s19 }
 0x8f0   :  { %v1389_v5 = vpop.permute.xlu1 %1388 }
 0x8f1   :  { %v1391_v6 = vadd.f32 %v1389_v5, %v1285_v4 }
 0x8f3   :  { %1862 = vtanh.f32 %v1391_v6 }
 0x8f4   :  { %v1270_v17 = vpop.permute.xlu1 %1269  ;;  %1864 = vpow2.f32 %v1646_v16 }
 0x8f5   :  { %v1272_v21 = vmul.f32 %v1855_v50, %v1270_v17 }
 0x900   :  { %v1863_v14 = vpop.eup %1862 }
 0x901   :  { %1395 = vrot.lane.b32.xlu0 %v1863_v14, %s2033_s19  ;;  %v1865_v24 = vpop.eup %1864 }
 0x902   :  { %v1380_v0 = vadd.f32 1.0, %v1865_v24 }
 0x904   :  { %1866 = vrcp.f32 %v1380_v0 }
 0x905   :  { %1401 = vrot.lane.b32.xlu0 %v2309_v22, %s2020_s25 }
 0x911   :  { %v1867_v25 = vpop.eup %1866 }
 0x912   :  { %v1393_v26 = vsub.f32 1.0, %v1867_v25  ;;  %v1399_v22 = vmul.f32 %v1867_v25, %v2147_v9 }
 0x94d   :  { %v1266_v20 = vpop.permute.xlu0 %1265 }
 0x94e   :  { %v1268_v23 = vmul.f32 %v1266_v20, %v1263_v18 }
 0x950   :  { %v1273_v63 = vadd.f32 %v1272_v21, %v1268_v23 }
 0x952   :  { %1409 = vrot.lane.b32.xlu1 %v1273_v63, %s2033_s19 }
 0x973   :  { %v1396_v27 = vpop.permute.xlu0 %1395 }
 0x974   :  { %v1398_v29 = vmul.f32 %v1396_v27, %v1393_v26 }
 0x976   :  { %v1400_v30 = vadd.f32 %v1399_v22, %v1398_v29 }
 0x977   :  { %v1402_v31 = vpop.permute.xlu0 %1401 }
 0x978   :  { %1407 = vrot.lane.b32.xlu0 %v1402_v31, %s2033_s19  ;;  %1404 = vrot.lane.b32.xlu1 %v1400_v30, %s2020_s25 }
 0x979   :  { %1792 = vmatmul.mubr.msk.f32.vlgmr.msra.gmra.mxu1 %vm125_vm1, %v1400_v30 }
 0x9c4   :  { %v1410_v32 = vpop.permute.xlu1 %1409 }
 0x9c5   :  { %1420 = vst.msk [vmem:[#allocation12 + $0x4] sm:$0x3] %vm1417_vm6, %v1410_v32  ;;  %1803 = vmatmul.mubr.msk.f32.vlgmr.msra.gmra.mxu0 %vm125_vm1, %v1410_v32 }
 0x9ea   :  { %v1408_v33 = vpop.permute.xlu0 %1407  ;;  %v1405_v34 = vpop.permute.xlu1 %1404 }
 0x9eb   :  { %1419 = vst.msk [vmem:[#allocation12 + $0x2] sm:$0x3] %vm1417_vm6, %v1408_v33  ;;  %1411 = vrot.lane.b32.xlu1 %v1405_v34, %s2033_s19 }
 0xa39   :  { %v1498_v9 = vpop.f32.mrf.mxu1 }
 0xa3b   :  { %v1793_v35 = vpop.f32.mrf.mxu1 }
 0xa5d   :  { %v1412_v19 = vpop.permute.xlu1 %1411 }
 0xa5e   :  { %1421 = vst.msk [vmem:[#allocation12 + $0x6] sm:$0x3] %vm1417_vm6, %v1412_v19 }
 0xa5f   :  { %1979 = shalt.err (!%p1976_p1)
}
 0xa60   :  { %1604 = dma.vmem_to_hbm [thread:$0]  %s1599_s6, 128, %s2400_s11, [#allocation13], %s2020_s25, %s2020_s25, %s2021_s26  }
 0xa61   :  { %v1649_v37 = vld [vmem:[%s2398_s9] ss:$0 sm:$0xff]  ;;  %s2036_s30 = smov [#allocation11]  }
 0xa62   :  { %s1589_s3 = sshll.u32 %s2036_s30, 4  ;;  %s1590_s3 = int_to_ptr.vmem [resolvable:$true] %s1589_s3 }
 0xa63   :  { %s1988_s8 = scalar_lea.vmem %s1590_s3, 32  ;;  %p1993_p3 = scmp.lt.s32.totalorder %s1590_s3, %s1590_s3 }
 0xa64   :  { %p1989_p2 = scmp.ne.s32.totalorder %s1590_s3, %s1988_s8  ;;  %p1994_p4 = scmp.lt.s32.totalorder %s1988_s8, %s1988_s8 }
 0xa66   :  { %p1995_p5 = por %p1994_p4, %p1993_p3 }
 0xa68   :  { %p1996_p6 = pnand %p1995_p5, %p1989_p2 }
 0xa85   :  { %v1570_v36 = vpop.f32.mrf.mxu0 }
 0xa86   :  { %v1571_v38 = vadd.f32 %v1570_v36, %v1498_v9 }
 0xa87   :  { %v1804_v39 = vpop.f32.mrf.mxu0 }
 0xa88   :  { %v1581_v40 = vadd.f32 %v1649_v37, %v1571_v38 }
 0xa8a   :  { %1582 = vst [vmem:[#allocation11] sm:$0x3] %v1581_v40 }
 0xa8b   :  { %1999 = shalt.err (!%p1996_p6)
}
 0xa8c   :  { %1592 = dma.vmem_to_hbm [thread:$0]  %s1590_s3, 32, %s2399_s10, [#allocation4]  }
 0xa8d   :  { %2014 = dma.done.wait [#allocation4], 32  }
 0xa8e   :  { %2015 = vsyncadd [#allocation4], 4294967264 }
 0xa8f   :  { %2016 = dma.done.wait [#allocation13], 128  }
 0xa90   :  { %2017 = vsyncadd [#allocation13], 4294967168 }
 0xa91   :  { %1611 = vsyncpa [#allocation3], 1 }
 0xa92   :  { %1612 = vsyncpa [#allocation6], 1 }
 0xa93   :  { %1613 = vsyncpa [#allocation9], 1 }
 0xa94   :  { %1614 = vsyncpa [#allocation4], 1 }
 0xa95   :  { %1615 = vsyncpa [#allocation13], 1 }

</bundles_post_ra>
